<compile_context>
chip_gen: v7x
topology: tpu7x:2x2x1
jax: 0.10.0
libtpu: 0.0.40
codegen_flags: <defaults>
</compile_context>

<pallas_src>
import jax
import jax.numpy as jnp
import numpy as np
from jax import lax
from jax.experimental import pallas as pl
from jax.experimental.pallas import tpu as pltpu

H = 32     # hidden_layer_size
NL = 2     # num_layers
IN = 1     # input_size
OUT = 1    # output_size
BB = 8     # batch block (sublane-aligned); raise toward 128 for realistic B


def lstm_model_kernel(x_ref,                        # (S, BB, 1) time-major input block
                      w1_ref, b1_ref,               # (1, H), (1, H)          linear_1
                      wih0_ref, whh0_ref, b0_ref,   # (H,4H), (H,4H), (1,4H)  layer 0, cols [i|f|o|g]
                      w1s_ref, b1g_ref,             # (2H,4H), (1,4H)         layer 1, [Wih1T;Whh1T]
                      w2_ref, b2_ref,               # (1,2H), (1,1)           linear_2
                      out_ref):                     # (BB, 1)
    S, B, _ = x_ref.shape

    # ---- linear_1 + tanh for all timesteps, kept in vregs ------------------
    w1 = jnp.broadcast_to(w1_ref[...], (B, H))      # hoisted broadcasts
    b1 = jnp.broadcast_to(b1_ref[...], (B, H))
    e_all = jnp.concatenate(
        [jnp.tanh(x_ref[t] * w1 + b1) for t in range(S)], axis=0)   # (S*B, H)

    # ---- hoisted layer-0 input projection: one (S*B,H)@(H,4H) matmul -------
    g0_all = (jnp.dot(e_all, wih0_ref[...],
                      preferred_element_type=jnp.float32)
              + b0_ref[...])                        # (S*B, 4H)

    whh0 = whh0_ref[...]                            # (H, 4H)
    w1s = w1s_ref[...]                              # (2H, 4H)
    b1g = jnp.broadcast_to(b1g_ref[...], (B, 4 * H))  # hoisted bias broadcast

    def lstm_act(gates, c_prev):
        # gate columns are [i | f | o | g]
        sig = jax.nn.sigmoid(gates[:, :3 * H])      # one pass over (B, 3H)
        g = jnp.tanh(gates[:, 3 * H:])              # one pass over (B, H)
        c_new = sig[:, H:2 * H] * c_prev + sig[:, :H] * g
        h_new = sig[:, 2 * H:3 * H] * jnp.tanh(c_new)
        return h_new, c_new

    zeros = jnp.zeros((B, H), jnp.float32)
    h0, c0, h1, c1 = zeros, zeros, zeros, zeros

    # ---- fused 2-layer recurrence, fully unrolled (S is small & static) ----
    for t in range(S):
        gates0 = g0_all[t * B:(t + 1) * B, :] + jnp.dot(
            h0, whh0, preferred_element_type=jnp.float32)          # (B, 4H)
        h0, c0 = lstm_act(gates0, c0)
        lhs1 = jnp.concatenate([h0, h1], axis=-1)                   # (B, 2H)
        gates1 = jnp.dot(lhs1, w1s,
                         preferred_element_type=jnp.float32) + b1g  # (B, 4H)
        h1, c1 = lstm_act(gates1, c1)

    # ---- concat(h_n) -> dropout(identity in eval) -> linear_2 --------------
    feat = jnp.concatenate([h0, h1], axis=-1)                       # (B, 2H)
    pred = jnp.sum(feat * w2_ref[...], axis=-1, keepdims=True) + b2_ref[...]
    out_ref[...] = pred


def _reorder_ifgo_to_ifog(w):
    """Permute 4H gate columns from PyTorch [i|f|g|o] to kernel [i|f|o|g]."""
    i, f, g, o = jnp.split(w, 4, axis=-1)
    return jnp.concatenate([i, f, o, g], axis=-1)


@jax.jit
def lstm_model_forward(x, params):
    """x: (B, S, 1) float32 (PyTorch batch_first layout). Returns (B,)."""
    B, S, _ = x.shape
    B_pad = ((B + BB - 1) // BB) * BB
    x_pad = jnp.pad(x, ((0, B_pad - B), (0, 0), (0, 0)))
    xt = jnp.transpose(x_pad, (1, 0, 2))            # time-major (S, B_pad, 1)

    # Kernel-layout weight prep (plain-JAX glue, fused into the jit):
    # column reorder to [i|f|o|g]; layer-1 Wih/Whh stacked along K.
    wih0 = _reorder_ifgo_to_ifog(params['wih0T'])
    whh0 = _reorder_ifgo_to_ifog(params['whh0T'])
    b0 = _reorder_ifgo_to_ifog(params['bias0'])
    w1s = jnp.concatenate([_reorder_ifgo_to_ifog(params['wih1T']),
                           _reorder_ifgo_to_ifog(params['whh1T'])], axis=0)  # (2H, 4H)
    b1g = _reorder_ifgo_to_ifog(params['bias1'])

    inputs = (xt, params['w1'], params['b1'],
              wih0, whh0, b0, w1s, b1g,
              params['w2'], params['b2'])

    def full_spec(a):  # whole-array block, same for every grid step
        return pl.BlockSpec(a.shape, lambda i: (0,) * a.ndim)

    in_specs = ([pl.BlockSpec((S, BB, 1), lambda i: (0, i, 0))]
                + [full_spec(a) for a in inputs[1:]])

    out = pl.pallas_call(
        lstm_model_kernel,
        out_shape=jax.ShapeDtypeStruct((B_pad, OUT), jnp.float32),
        grid=(B_pad // BB,),
        in_specs=in_specs,
        out_specs=pl.BlockSpec((BB, OUT), lambda i: (i, 0)),
        compiler_params=pltpu.CompilerParams(
            dimension_semantics=("parallel",)),   # batch blocks across TCs (v7x)
    )(*inputs)
    return out[:B, 0]                             # predictions[:, -1] -> (B,)


def init_params(key):
    ks = jax.random.split(key, 8)

    def xavier_normal(k, shape):
        fan_out, fan_in = shape
        std = (2.0 / (fan_in + fan_out)) ** 0.5
        return std * jax.random.normal(k, shape, jnp.float32)

    # linear_1: weight (H, IN), bias (H,)
    w1 = jax.random.normal(ks[0], (H, IN), jnp.float32) / jnp.sqrt(IN)
    b1 = 0.1 * jax.random.normal(ks[1], (H,), jnp.float32)
    # LSTM weights: xavier normal, biases zero (per init_weights)
    wih0 = xavier_normal(ks[2], (4 * H, H))
    whh0 = xavier_normal(ks[3], (4 * H, H))
    wih1 = xavier_normal(ks[4], (4 * H, H))
    whh1 = xavier_normal(ks[5], (4 * H, H))
    # linear_2: weight (OUT, NL*H), bias (OUT,)
    w2 = jax.random.normal(ks[6], (OUT, NL * H), jnp.float32) / jnp.sqrt(NL * H)
    b2 = 0.1 * jax.random.normal(ks[7], (OUT,), jnp.float32)

    return dict(
        w1=w1.T,                                   # (1, H)
        b1=b1.reshape(1, H),
        wih0T=wih0.T, whh0T=whh0.T,                # (H, 4H), PyTorch gate order [i|f|g|o]
        bias0=jnp.zeros((1, 4 * H), jnp.float32),  # b_ih + b_hh == 0 (init_weights)
        wih1T=wih1.T, whh1T=whh1.T,
        bias1=jnp.zeros((1, 4 * H), jnp.float32),
        w2=w2,                                     # (1, 2H)
        b2=b2.reshape(1, OUT),
    )


def reference_forward(x, params):
    """Pure-JAX reference reproducing the PyTorch forward (eval mode)."""
    B, S, _ = x.shape
    e = jnp.tanh(x * params['w1'] + params['b1'][0])          # (B, S, H)

    def layer(seq, wihT, whhT, bias):
        def step(carry, xt):
            h, c = carry
            gates = xt @ wihT + h @ whhT + bias
            i, f, g, o = jnp.split(gates, 4, axis=-1)
            c = jax.nn.sigmoid(f) * c + jax.nn.sigmoid(i) * jnp.tanh(g)
            h = jax.nn.sigmoid(o) * jnp.tanh(c)
            return (h, c), h
        init = (jnp.zeros((B, H), jnp.float32), jnp.zeros((B, H), jnp.float32))
        (h_fin, _), ys = lax.scan(step, init, jnp.transpose(seq, (1, 0, 2)))
        return jnp.transpose(ys, (1, 0, 2)), h_fin

    seq0, h0 = layer(e, params['wih0T'], params['whh0T'], params['bias0'][0])
    _, h1 = layer(seq0, params['wih1T'], params['whh1T'], params['bias1'][0])
    feat = jnp.concatenate([h0, h1], axis=-1)
    pred = jnp.sum(feat * params['w2'], axis=-1, keepdims=True) + params['b2'][0]
    return pred[:, -1]


if __name__ == "__main__":
    key = jax.random.PRNGKey(0)
    k_x, k_p = jax.random.split(key)

    B, S = 2, 8
    x = jax.random.normal(k_x, (B, S, IN), jnp.float32)
    params = init_params(k_p)

    out = jax.block_until_ready(lstm_model_forward(x, params))
    ref = jax.block_until_ready(reference_forward(x, params))
    np.testing.assert_allclose(np.asarray(out), np.asarray(ref),
                               rtol=2e-3, atol=2e-3)

    print("KERNEL_OK")
</pallas_src>

<mosaic_0001>
module attributes {stable_mosaic.version = 11 : i64} {
  func.func @lstm_model_kernel(%arg0: i32, %arg1: memref<8x8x1xf32, #tpu.memory_space<vmem>>, %arg2: memref<1x32xf32, #tpu.memory_space<vmem>>, %arg3: memref<1x32xf32, #tpu.memory_space<vmem>>, %arg4: memref<32x128xf32, #tpu.memory_space<vmem>>, %arg5: memref<32x128xf32, #tpu.memory_space<vmem>>, %arg6: memref<1x128xf32, #tpu.memory_space<vmem>>, %arg7: memref<64x128xf32, #tpu.memory_space<vmem>>, %arg8: memref<1x128xf32, #tpu.memory_space<vmem>>, %arg9: memref<1x64xf32, #tpu.memory_space<vmem>>, %arg10: memref<1x1xf32, #tpu.memory_space<vmem>>, %arg11: memref<8x1xf32, #tpu.memory_space<vmem>>) attributes {dimension_semantics = [#tpu.dimension_semantics<parallel>], iteration_bounds = array<i64: 1>, scalar_prefetch = 0 : i64, scratch_operands = 0 : i64, tpu.core_type = #tpu.core_type<tc>, window_params = [{transform_indices = @transform_0, window_bounds = array<i64: 8, 8, 1>}, {pipeline_mode = #tpu.pipeline_mode<synchronous>, transform_indices = @transform_1, window_bounds = array<i64: 1, 32>}, {pipeline_mode = #tpu.pipeline_mode<synchronous>, transform_indices = @transform_2, window_bounds = array<i64: 1, 32>}, {pipeline_mode = #tpu.pipeline_mode<synchronous>, transform_indices = @transform_3, window_bounds = array<i64: 32, 128>}, {pipeline_mode = #tpu.pipeline_mode<synchronous>, transform_indices = @transform_4, window_bounds = array<i64: 32, 128>}, {pipeline_mode = #tpu.pipeline_mode<synchronous>, transform_indices = @transform_5, window_bounds = array<i64: 1, 128>}, {pipeline_mode = #tpu.pipeline_mode<synchronous>, transform_indices = @transform_6, window_bounds = array<i64: 64, 128>}, {pipeline_mode = #tpu.pipeline_mode<synchronous>, transform_indices = @transform_7, window_bounds = array<i64: 1, 128>}, {pipeline_mode = #tpu.pipeline_mode<synchronous>, transform_indices = @transform_8, window_bounds = array<i64: 1, 64>}, {pipeline_mode = #tpu.pipeline_mode<synchronous>, transform_indices = @transform_9, window_bounds = array<i64: 1, 1>}, {transform_indices = @transform_10, window_bounds = array<i64: 8, 1>}]} {
    %c0 = arith.constant 0 : index
    %c0_0 = arith.constant 0 : index
    %0 = vector.load %arg2[%c0, %c0_0] : memref<1x32xf32, #tpu.memory_space<vmem>>, vector<1x32xf32>
    %1 = vector.shape_cast %0 : vector<1x32xf32> to vector<1x32xf32>
    %2 = vector.broadcast %1 : vector<1x32xf32> to vector<8x32xf32>
    %c0_1 = arith.constant 0 : index
    %c0_2 = arith.constant 0 : index
    %3 = vector.load %arg3[%c0_1, %c0_2] : memref<1x32xf32, #tpu.memory_space<vmem>>, vector<1x32xf32>
    %4 = vector.shape_cast %3 : vector<1x32xf32> to vector<1x32xf32>
    %5 = vector.broadcast %4 : vector<1x32xf32> to vector<8x32xf32>
    %c0_3 = arith.constant 0 : index
    %c0_4 = arith.constant 0 : index
    %c0_5 = arith.constant 0 : index
    %6 = vector.load %arg1[%c0_3, %c0_4, %c0_5] : memref<8x8x1xf32, #tpu.memory_space<vmem>>, vector<1x8x1xf32>
    %7 = vector.shape_cast %6 : vector<1x8x1xf32> to vector<8x1xf32>
    %8 = vector.broadcast %7 : vector<8x1xf32> to vector<8x32xf32>
    %9 = arith.mulf %8, %2 : vector<8x32xf32>
    %10 = arith.addf %9, %5 : vector<8x32xf32>
    %11 = math.tanh %10 : vector<8x32xf32>
    %c1 = arith.constant 1 : index
    %c0_6 = arith.constant 0 : index
    %c0_7 = arith.constant 0 : index
    %12 = vector.load %arg1[%c1, %c0_6, %c0_7] : memref<8x8x1xf32, #tpu.memory_space<vmem>>, vector<1x8x1xf32>
    %13 = vector.shape_cast %12 : vector<1x8x1xf32> to vector<8x1xf32>
    %14 = vector.broadcast %13 : vector<8x1xf32> to vector<8x32xf32>
    %15 = arith.mulf %14, %2 : vector<8x32xf32>
    %16 = arith.addf %15, %5 : vector<8x32xf32>
    %17 = math.tanh %16 : vector<8x32xf32>
    %c2 = arith.constant 2 : index
    %c0_8 = arith.constant 0 : index
    %c0_9 = arith.constant 0 : index
    %18 = vector.load %arg1[%c2, %c0_8, %c0_9] : memref<8x8x1xf32, #tpu.memory_space<vmem>>, vector<1x8x1xf32>
    %19 = vector.shape_cast %18 : vector<1x8x1xf32> to vector<8x1xf32>
    %20 = vector.broadcast %19 : vector<8x1xf32> to vector<8x32xf32>
    %21 = arith.mulf %20, %2 : vector<8x32xf32>
    %22 = arith.addf %21, %5 : vector<8x32xf32>
    %23 = math.tanh %22 : vector<8x32xf32>
    %c3 = arith.constant 3 : index
    %c0_10 = arith.constant 0 : index
    %c0_11 = arith.constant 0 : index
    %24 = vector.load %arg1[%c3, %c0_10, %c0_11] : memref<8x8x1xf32, #tpu.memory_space<vmem>>, vector<1x8x1xf32>
    %25 = vector.shape_cast %24 : vector<1x8x1xf32> to vector<8x1xf32>
    %26 = vector.broadcast %25 : vector<8x1xf32> to vector<8x32xf32>
    %27 = arith.mulf %26, %2 : vector<8x32xf32>
    %28 = arith.addf %27, %5 : vector<8x32xf32>
    %29 = math.tanh %28 : vector<8x32xf32>
    %c4 = arith.constant 4 : index
    %c0_12 = arith.constant 0 : index
    %c0_13 = arith.constant 0 : index
    %30 = vector.load %arg1[%c4, %c0_12, %c0_13] : memref<8x8x1xf32, #tpu.memory_space<vmem>>, vector<1x8x1xf32>
    %31 = vector.shape_cast %30 : vector<1x8x1xf32> to vector<8x1xf32>
    %32 = vector.broadcast %31 : vector<8x1xf32> to vector<8x32xf32>
    %33 = arith.mulf %32, %2 : vector<8x32xf32>
    %34 = arith.addf %33, %5 : vector<8x32xf32>
    %35 = math.tanh %34 : vector<8x32xf32>
    %c5 = arith.constant 5 : index
    %c0_14 = arith.constant 0 : index
    %c0_15 = arith.constant 0 : index
    %36 = vector.load %arg1[%c5, %c0_14, %c0_15] : memref<8x8x1xf32, #tpu.memory_space<vmem>>, vector<1x8x1xf32>
    %37 = vector.shape_cast %36 : vector<1x8x1xf32> to vector<8x1xf32>
    %38 = vector.broadcast %37 : vector<8x1xf32> to vector<8x32xf32>
    %39 = arith.mulf %38, %2 : vector<8x32xf32>
    %40 = arith.addf %39, %5 : vector<8x32xf32>
    %41 = math.tanh %40 : vector<8x32xf32>
    %c6 = arith.constant 6 : index
    %c0_16 = arith.constant 0 : index
    %c0_17 = arith.constant 0 : index
    %42 = vector.load %arg1[%c6, %c0_16, %c0_17] : memref<8x8x1xf32, #tpu.memory_space<vmem>>, vector<1x8x1xf32>
    %43 = vector.shape_cast %42 : vector<1x8x1xf32> to vector<8x1xf32>
    %44 = vector.broadcast %43 : vector<8x1xf32> to vector<8x32xf32>
    %45 = arith.mulf %44, %2 : vector<8x32xf32>
    %46 = arith.addf %45, %5 : vector<8x32xf32>
    %47 = math.tanh %46 : vector<8x32xf32>
    %c7 = arith.constant 7 : index
    %c0_18 = arith.constant 0 : index
    %c0_19 = arith.constant 0 : index
    %48 = vector.load %arg1[%c7, %c0_18, %c0_19] : memref<8x8x1xf32, #tpu.memory_space<vmem>>, vector<1x8x1xf32>
    %49 = vector.shape_cast %48 : vector<1x8x1xf32> to vector<8x1xf32>
    %50 = vector.broadcast %49 : vector<8x1xf32> to vector<8x32xf32>
    %51 = arith.mulf %50, %2 : vector<8x32xf32>
    %52 = arith.addf %51, %5 : vector<8x32xf32>
    %53 = math.tanh %52 : vector<8x32xf32>
    %54 = tpu.concatenate %11, %17, %23, %29, %35, %41, %47, %53 in 0 : vector<8x32xf32>, vector<8x32xf32>, vector<8x32xf32>, vector<8x32xf32>, vector<8x32xf32>, vector<8x32xf32>, vector<8x32xf32>, vector<8x32xf32> -> vector<64x32xf32>
    %c0_20 = arith.constant 0 : index
    %c0_21 = arith.constant 0 : index
    %55 = vector.load %arg4[%c0_20, %c0_21] : memref<32x128xf32, #tpu.memory_space<vmem>>, vector<32x128xf32>
    %cst = arith.constant dense<0.000000e+00> : vector<64x128xf32>
    %56 = tpu.matmul %54, %55, %cst {dimension_numbers = #tpu.dot_dimension_numbers<[1], [0], [0], [1], [0, 0, 1, 1], [], []>} : vector<64x32xf32>, vector<32x128xf32>, vector<64x128xf32> -> vector<64x128xf32>
    %c0_22 = arith.constant 0 : index
    %c0_23 = arith.constant 0 : index
    %57 = vector.load %arg6[%c0_22, %c0_23] : memref<1x128xf32, #tpu.memory_space<vmem>>, vector<1x128xf32>
    %58 = vector.broadcast %57 : vector<1x128xf32> to vector<64x128xf32>
    %59 = arith.addf %56, %58 : vector<64x128xf32>
    %c0_24 = arith.constant 0 : index
    %c0_25 = arith.constant 0 : index
    %60 = vector.load %arg5[%c0_24, %c0_25] : memref<32x128xf32, #tpu.memory_space<vmem>>, vector<32x128xf32>
    %c0_26 = arith.constant 0 : index
    %c0_27 = arith.constant 0 : index
    %61 = vector.load %arg7[%c0_26, %c0_27] : memref<64x128xf32, #tpu.memory_space<vmem>>, vector<64x128xf32>
    %c0_28 = arith.constant 0 : index
    %c0_29 = arith.constant 0 : index
    %62 = vector.load %arg8[%c0_28, %c0_29] : memref<1x128xf32, #tpu.memory_space<vmem>>, vector<1x128xf32>
    %63 = vector.shape_cast %62 : vector<1x128xf32> to vector<1x128xf32>
    %64 = vector.broadcast %63 : vector<1x128xf32> to vector<8x128xf32>
    %cst_30 = arith.constant 0.000000e+00 : f32
    %65 = vector.broadcast %cst_30 : f32 to vector<8x32xf32>
    %66 = vector.extract_strided_slice %59 {offsets = [0, 0], sizes = [8, 128], strides = [1, 1]} : vector<64x128xf32> to vector<8x128xf32>
    %cst_31 = arith.constant dense<0.000000e+00> : vector<8x128xf32>
    %67 = tpu.matmul %65, %60, %cst_31 {dimension_numbers = #tpu.dot_dimension_numbers<[1], [0], [0], [1], [0, 0, 1, 1], [], []>} : vector<8x32xf32>, vector<32x128xf32>, vector<8x128xf32> -> vector<8x128xf32>
    %68 = arith.addf %66, %67 : vector<8x128xf32>
    %69 = vector.extract_strided_slice %68 {offsets = [0, 0], sizes = [8, 96], strides = [1, 1]} : vector<8x128xf32> to vector<8x96xf32>
    %70 = arith.negf %69 : vector<8x96xf32>
    %71 = math.exp %70 : vector<8x96xf32>
    %cst_32 = arith.constant 1.000000e+00 : f32
    %72 = vector.broadcast %cst_32 : f32 to vector<8x96xf32>
    %73 = arith.addf %72, %71 : vector<8x96xf32>
    %74 = arith.divf %72, %73 : vector<8x96xf32>
    %75 = vector.extract_strided_slice %68 {offsets = [0, 96], sizes = [8, 32], strides = [1, 1]} : vector<8x128xf32> to vector<8x32xf32>
    %76 = math.tanh %75 : vector<8x32xf32>
    %77 = vector.extract_strided_slice %74 {offsets = [0, 32], sizes = [8, 32], strides = [1, 1]} : vector<8x96xf32> to vector<8x32xf32>
    %78 = arith.mulf %77, %65 : vector<8x32xf32>
    %79 = vector.extract_strided_slice %74 {offsets = [0, 0], sizes = [8, 32], strides = [1, 1]} : vector<8x96xf32> to vector<8x32xf32>
    %80 = arith.mulf %79, %76 : vector<8x32xf32>
    %81 = arith.addf %78, %80 : vector<8x32xf32>
    %82 = vector.extract_strided_slice %74 {offsets = [0, 64], sizes = [8, 32], strides = [1, 1]} : vector<8x96xf32> to vector<8x32xf32>
    %83 = math.tanh %81 : vector<8x32xf32>
    %84 = arith.mulf %82, %83 : vector<8x32xf32>
    %85 = tpu.concatenate %84, %65 in 1 : vector<8x32xf32>, vector<8x32xf32> -> vector<8x64xf32>
    %cst_33 = arith.constant dense<0.000000e+00> : vector<8x128xf32>
    %86 = tpu.matmul %85, %61, %cst_33 {dimension_numbers = #tpu.dot_dimension_numbers<[1], [0], [0], [1], [0, 0, 1, 1], [], []>} : vector<8x64xf32>, vector<64x128xf32>, vector<8x128xf32> -> vector<8x128xf32>
    %87 = arith.addf %86, %64 : vector<8x128xf32>
    %88 = vector.extract_strided_slice %87 {offsets = [0, 0], sizes = [8, 96], strides = [1, 1]} : vector<8x128xf32> to vector<8x96xf32>
    %89 = arith.negf %88 : vector<8x96xf32>
    %90 = math.exp %89 : vector<8x96xf32>
    %cst_34 = arith.constant 1.000000e+00 : f32
    %91 = vector.broadcast %cst_34 : f32 to vector<8x96xf32>
    %92 = arith.addf %91, %90 : vector<8x96xf32>
    %93 = arith.divf %91, %92 : vector<8x96xf32>
    %94 = vector.extract_strided_slice %87 {offsets = [0, 96], sizes = [8, 32], strides = [1, 1]} : vector<8x128xf32> to vector<8x32xf32>
    %95 = math.tanh %94 : vector<8x32xf32>
    %96 = vector.extract_strided_slice %93 {offsets = [0, 32], sizes = [8, 32], strides = [1, 1]} : vector<8x96xf32> to vector<8x32xf32>
    %97 = arith.mulf %96, %65 : vector<8x32xf32>
    %98 = vector.extract_strided_slice %93 {offsets = [0, 0], sizes = [8, 32], strides = [1, 1]} : vector<8x96xf32> to vector<8x32xf32>
    %99 = arith.mulf %98, %95 : vector<8x32xf32>
    %100 = arith.addf %97, %99 : vector<8x32xf32>
    %101 = vector.extract_strided_slice %93 {offsets = [0, 64], sizes = [8, 32], strides = [1, 1]} : vector<8x96xf32> to vector<8x32xf32>
    %102 = math.tanh %100 : vector<8x32xf32>
    %103 = arith.mulf %101, %102 : vector<8x32xf32>
    %104 = vector.extract_strided_slice %59 {offsets = [8, 0], sizes = [8, 128], strides = [1, 1]} : vector<64x128xf32> to vector<8x128xf32>
    %cst_35 = arith.constant dense<0.000000e+00> : vector<8x128xf32>
    %105 = tpu.matmul %84, %60, %cst_35 {dimension_numbers = #tpu.dot_dimension_numbers<[1], [0], [0], [1], [0, 0, 1, 1], [], []>} : vector<8x32xf32>, vector<32x128xf32>, vector<8x128xf32> -> vector<8x128xf32>
    %106 = arith.addf %104, %105 : vector<8x128xf32>
    %107 = vector.extract_strided_slice %106 {offsets = [0, 0], sizes = [8, 96], strides = [1, 1]} : vector<8x128xf32> to vector<8x96xf32>
    %108 = arith.negf %107 : vector<8x96xf32>
    %109 = math.exp %108 : vector<8x96xf32>
    %cst_36 = arith.constant 1.000000e+00 : f32
    %110 = vector.broadcast %cst_36 : f32 to vector<8x96xf32>
    %111 = arith.addf %110, %109 : vector<8x96xf32>
    %112 = arith.divf %110, %111 : vector<8x96xf32>
    %113 = vector.extract_strided_slice %106 {offsets = [0, 96], sizes = [8, 32], strides = [1, 1]} : vector<8x128xf32> to vector<8x32xf32>
    %114 = math.tanh %113 : vector<8x32xf32>
    %115 = vector.extract_strided_slice %112 {offsets = [0, 32], sizes = [8, 32], strides = [1, 1]} : vector<8x96xf32> to vector<8x32xf32>
    %116 = arith.mulf %115, %81 : vector<8x32xf32>
    %117 = vector.extract_strided_slice %112 {offsets = [0, 0], sizes = [8, 32], strides = [1, 1]} : vector<8x96xf32> to vector<8x32xf32>
    %118 = arith.mulf %117, %114 : vector<8x32xf32>
    %119 = arith.addf %116, %118 : vector<8x32xf32>
    %120 = vector.extract_strided_slice %112 {offsets = [0, 64], sizes = [8, 32], strides = [1, 1]} : vector<8x96xf32> to vector<8x32xf32>
    %121 = math.tanh %119 : vector<8x32xf32>
    %122 = arith.mulf %120, %121 : vector<8x32xf32>
    %123 = tpu.concatenate %122, %103 in 1 : vector<8x32xf32>, vector<8x32xf32> -> vector<8x64xf32>
    %cst_37 = arith.constant dense<0.000000e+00> : vector<8x128xf32>
    %124 = tpu.matmul %123, %61, %cst_37 {dimension_numbers = #tpu.dot_dimension_numbers<[1], [0], [0], [1], [0, 0, 1, 1], [], []>} : vector<8x64xf32>, vector<64x128xf32>, vector<8x128xf32> -> vector<8x128xf32>
    %125 = arith.addf %124, %64 : vector<8x128xf32>
    %126 = vector.extract_strided_slice %125 {offsets = [0, 0], sizes = [8, 96], strides = [1, 1]} : vector<8x128xf32> to vector<8x96xf32>
    %127 = arith.negf %126 : vector<8x96xf32>
    %128 = math.exp %127 : vector<8x96xf32>
    %cst_38 = arith.constant 1.000000e+00 : f32
    %129 = vector.broadcast %cst_38 : f32 to vector<8x96xf32>
    %130 = arith.addf %129, %128 : vector<8x96xf32>
    %131 = arith.divf %129, %130 : vector<8x96xf32>
    %132 = vector.extract_strided_slice %125 {offsets = [0, 96], sizes = [8, 32], strides = [1, 1]} : vector<8x128xf32> to vector<8x32xf32>
    %133 = math.tanh %132 : vector<8x32xf32>
    %134 = vector.extract_strided_slice %131 {offsets = [0, 32], sizes = [8, 32], strides = [1, 1]} : vector<8x96xf32> to vector<8x32xf32>
    %135 = arith.mulf %134, %100 : vector<8x32xf32>
    %136 = vector.extract_strided_slice %131 {offsets = [0, 0], sizes = [8, 32], strides = [1, 1]} : vector<8x96xf32> to vector<8x32xf32>
    %137 = arith.mulf %136, %133 : vector<8x32xf32>
    %138 = arith.addf %135, %137 : vector<8x32xf32>
    %139 = vector.extract_strided_slice %131 {offsets = [0, 64], sizes = [8, 32], strides = [1, 1]} : vector<8x96xf32> to vector<8x32xf32>
    %140 = math.tanh %138 : vector<8x32xf32>
    %141 = arith.mulf %139, %140 : vector<8x32xf32>
    %142 = vector.extract_strided_slice %59 {offsets = [16, 0], sizes = [8, 128], strides = [1, 1]} : vector<64x128xf32> to vector<8x128xf32>
    %cst_39 = arith.constant dense<0.000000e+00> : vector<8x128xf32>
    %143 = tpu.matmul %122, %60, %cst_39 {dimension_numbers = #tpu.dot_dimension_numbers<[1], [0], [0], [1], [0, 0, 1, 1], [], []>} : vector<8x32xf32>, vector<32x128xf32>, vector<8x128xf32> -> vector<8x128xf32>
    %144 = arith.addf %142, %143 : vector<8x128xf32>
    %145 = vector.extract_strided_slice %144 {offsets = [0, 0], sizes = [8, 96], strides = [1, 1]} : vector<8x128xf32> to vector<8x96xf32>
    %146 = arith.negf %145 : vector<8x96xf32>
    %147 = math.exp %146 : vector<8x96xf32>
    %cst_40 = arith.constant 1.000000e+00 : f32
    %148 = vector.broadcast %cst_40 : f32 to vector<8x96xf32>
    %149 = arith.addf %148, %147 : vector<8x96xf32>
    %150 = arith.divf %148, %149 : vector<8x96xf32>
    %151 = vector.extract_strided_slice %144 {offsets = [0, 96], sizes = [8, 32], strides = [1, 1]} : vector<8x128xf32> to vector<8x32xf32>
    %152 = math.tanh %151 : vector<8x32xf32>
    %153 = vector.extract_strided_slice %150 {offsets = [0, 32], sizes = [8, 32], strides = [1, 1]} : vector<8x96xf32> to vector<8x32xf32>
    %154 = arith.mulf %153, %119 : vector<8x32xf32>
    %155 = vector.extract_strided_slice %150 {offsets = [0, 0], sizes = [8, 32], strides = [1, 1]} : vector<8x96xf32> to vector<8x32xf32>
    %156 = arith.mulf %155, %152 : vector<8x32xf32>
    %157 = arith.addf %154, %156 : vector<8x32xf32>
    %158 = vector.extract_strided_slice %150 {offsets = [0, 64], sizes = [8, 32], strides = [1, 1]} : vector<8x96xf32> to vector<8x32xf32>
    %159 = math.tanh %157 : vector<8x32xf32>
    %160 = arith.mulf %158, %159 : vector<8x32xf32>
    %161 = tpu.concatenate %160, %141 in 1 : vector<8x32xf32>, vector<8x32xf32> -> vector<8x64xf32>
    %cst_41 = arith.constant dense<0.000000e+00> : vector<8x128xf32>
    %162 = tpu.matmul %161, %61, %cst_41 {dimension_numbers = #tpu.dot_dimension_numbers<[1], [0], [0], [1], [0, 0, 1, 1], [], []>} : vector<8x64xf32>, vector<64x128xf32>, vector<8x128xf32> -> vector<8x128xf32>
    %163 = arith.addf %162, %64 : vector<8x128xf32>
    %164 = vector.extract_strided_slice %163 {offsets = [0, 0], sizes = [8, 96], strides = [1, 1]} : vector<8x128xf32> to vector<8x96xf32>
    %165 = arith.negf %164 : vector<8x96xf32>
    %166 = math.exp %165 : vector<8x96xf32>
    %cst_42 = arith.constant 1.000000e+00 : f32
    %167 = vector.broadcast %cst_42 : f32 to vector<8x96xf32>
    %168 = arith.addf %167, %166 : vector<8x96xf32>
    %169 = arith.divf %167, %168 : vector<8x96xf32>
    %170 = vector.extract_strided_slice %163 {offsets = [0, 96], sizes = [8, 32], strides = [1, 1]} : vector<8x128xf32> to vector<8x32xf32>
    %171 = math.tanh %170 : vector<8x32xf32>
    %172 = vector.extract_strided_slice %169 {offsets = [0, 32], sizes = [8, 32], strides = [1, 1]} : vector<8x96xf32> to vector<8x32xf32>
    %173 = arith.mulf %172, %138 : vector<8x32xf32>
    %174 = vector.extract_strided_slice %169 {offsets = [0, 0], sizes = [8, 32], strides = [1, 1]} : vector<8x96xf32> to vector<8x32xf32>
    %175 = arith.mulf %174, %171 : vector<8x32xf32>
    %176 = arith.addf %173, %175 : vector<8x32xf32>
    %177 = vector.extract_strided_slice %169 {offsets = [0, 64], sizes = [8, 32], strides = [1, 1]} : vector<8x96xf32> to vector<8x32xf32>
    %178 = math.tanh %176 : vector<8x32xf32>
    %179 = arith.mulf %177, %178 : vector<8x32xf32>
    %180 = vector.extract_strided_slice %59 {offsets = [24, 0], sizes = [8, 128], strides = [1, 1]} : vector<64x128xf32> to vector<8x128xf32>
    %cst_43 = arith.constant dense<0.000000e+00> : vector<8x128xf32>
    %181 = tpu.matmul %160, %60, %cst_43 {dimension_numbers = #tpu.dot_dimension_numbers<[1], [0], [0], [1], [0, 0, 1, 1], [], []>} : vector<8x32xf32>, vector<32x128xf32>, vector<8x128xf32> -> vector<8x128xf32>
    %182 = arith.addf %180, %181 : vector<8x128xf32>
    %183 = vector.extract_strided_slice %182 {offsets = [0, 0], sizes = [8, 96], strides = [1, 1]} : vector<8x128xf32> to vector<8x96xf32>
    %184 = arith.negf %183 : vector<8x96xf32>
    %185 = math.exp %184 : vector<8x96xf32>
    %cst_44 = arith.constant 1.000000e+00 : f32
    %186 = vector.broadcast %cst_44 : f32 to vector<8x96xf32>
    %187 = arith.addf %186, %185 : vector<8x96xf32>
    %188 = arith.divf %186, %187 : vector<8x96xf32>
    %189 = vector.extract_strided_slice %182 {offsets = [0, 96], sizes = [8, 32], strides = [1, 1]} : vector<8x128xf32> to vector<8x32xf32>
    %190 = math.tanh %189 : vector<8x32xf32>
    %191 = vector.extract_strided_slice %188 {offsets = [0, 32], sizes = [8, 32], strides = [1, 1]} : vector<8x96xf32> to vector<8x32xf32>
    %192 = arith.mulf %191, %157 : vector<8x32xf32>
    %193 = vector.extract_strided_slice %188 {offsets = [0, 0], sizes = [8, 32], strides = [1, 1]} : vector<8x96xf32> to vector<8x32xf32>
    %194 = arith.mulf %193, %190 : vector<8x32xf32>
    %195 = arith.addf %192, %194 : vector<8x32xf32>
    %196 = vector.extract_strided_slice %188 {offsets = [0, 64], sizes = [8, 32], strides = [1, 1]} : vector<8x96xf32> to vector<8x32xf32>
    %197 = math.tanh %195 : vector<8x32xf32>
    %198 = arith.mulf %196, %197 : vector<8x32xf32>
    %199 = tpu.concatenate %198, %179 in 1 : vector<8x32xf32>, vector<8x32xf32> -> vector<8x64xf32>
    %cst_45 = arith.constant dense<0.000000e+00> : vector<8x128xf32>
    %200 = tpu.matmul %199, %61, %cst_45 {dimension_numbers = #tpu.dot_dimension_numbers<[1], [0], [0], [1], [0, 0, 1, 1], [], []>} : vector<8x64xf32>, vector<64x128xf32>, vector<8x128xf32> -> vector<8x128xf32>
    %201 = arith.addf %200, %64 : vector<8x128xf32>
    %202 = vector.extract_strided_slice %201 {offsets = [0, 0], sizes = [8, 96], strides = [1, 1]} : vector<8x128xf32> to vector<8x96xf32>
    %203 = arith.negf %202 : vector<8x96xf32>
    %204 = math.exp %203 : vector<8x96xf32>
    %cst_46 = arith.constant 1.000000e+00 : f32
    %205 = vector.broadcast %cst_46 : f32 to vector<8x96xf32>
    %206 = arith.addf %205, %204 : vector<8x96xf32>
    %207 = arith.divf %205, %206 : vector<8x96xf32>
    %208 = vector.extract_strided_slice %201 {offsets = [0, 96], sizes = [8, 32], strides = [1, 1]} : vector<8x128xf32> to vector<8x32xf32>
    %209 = math.tanh %208 : vector<8x32xf32>
    %210 = vector.extract_strided_slice %207 {offsets = [0, 32], sizes = [8, 32], strides = [1, 1]} : vector<8x96xf32> to vector<8x32xf32>
    %211 = arith.mulf %210, %176 : vector<8x32xf32>
    %212 = vector.extract_strided_slice %207 {offsets = [0, 0], sizes = [8, 32], strides = [1, 1]} : vector<8x96xf32> to vector<8x32xf32>
    %213 = arith.mulf %212, %209 : vector<8x32xf32>
    %214 = arith.addf %211, %213 : vector<8x32xf32>
    %215 = vector.extract_strided_slice %207 {offsets = [0, 64], sizes = [8, 32], strides = [1, 1]} : vector<8x96xf32> to vector<8x32xf32>
    %216 = math.tanh %214 : vector<8x32xf32>
    %217 = arith.mulf %215, %216 : vector<8x32xf32>
    %218 = vector.extract_strided_slice %59 {offsets = [32, 0], sizes = [8, 128], strides = [1, 1]} : vector<64x128xf32> to vector<8x128xf32>
    %cst_47 = arith.constant dense<0.000000e+00> : vector<8x128xf32>
    %219 = tpu.matmul %198, %60, %cst_47 {dimension_numbers = #tpu.dot_dimension_numbers<[1], [0], [0], [1], [0, 0, 1, 1], [], []>} : vector<8x32xf32>, vector<32x128xf32>, vector<8x128xf32> -> vector<8x128xf32>
    %220 = arith.addf %218, %219 : vector<8x128xf32>
    %221 = vector.extract_strided_slice %220 {offsets = [0, 0], sizes = [8, 96], strides = [1, 1]} : vector<8x128xf32> to vector<8x96xf32>
    %222 = arith.negf %221 : vector<8x96xf32>
    %223 = math.exp %222 : vector<8x96xf32>
    %cst_48 = arith.constant 1.000000e+00 : f32
    %224 = vector.broadcast %cst_48 : f32 to vector<8x96xf32>
    %225 = arith.addf %224, %223 : vector<8x96xf32>
    %226 = arith.divf %224, %225 : vector<8x96xf32>
    %227 = vector.extract_strided_slice %220 {offsets = [0, 96], sizes = [8, 32], strides = [1, 1]} : vector<8x128xf32> to vector<8x32xf32>
    %228 = math.tanh %227 : vector<8x32xf32>
    %229 = vector.extract_strided_slice %226 {offsets = [0, 32], sizes = [8, 32], strides = [1, 1]} : vector<8x96xf32> to vector<8x32xf32>
    %230 = arith.mulf %229, %195 : vector<8x32xf32>
    %231 = vector.extract_strided_slice %226 {offsets = [0, 0], sizes = [8, 32], strides = [1, 1]} : vector<8x96xf32> to vector<8x32xf32>
    %232 = arith.mulf %231, %228 : vector<8x32xf32>
    %233 = arith.addf %230, %232 : vector<8x32xf32>
    %234 = vector.extract_strided_slice %226 {offsets = [0, 64], sizes = [8, 32], strides = [1, 1]} : vector<8x96xf32> to vector<8x32xf32>
    %235 = math.tanh %233 : vector<8x32xf32>
    %236 = arith.mulf %234, %235 : vector<8x32xf32>
    %237 = tpu.concatenate %236, %217 in 1 : vector<8x32xf32>, vector<8x32xf32> -> vector<8x64xf32>
    %cst_49 = arith.constant dense<0.000000e+00> : vector<8x128xf32>
    %238 = tpu.matmul %237, %61, %cst_49 {dimension_numbers = #tpu.dot_dimension_numbers<[1], [0], [0], [1], [0, 0, 1, 1], [], []>} : vector<8x64xf32>, vector<64x128xf32>, vector<8x128xf32> -> vector<8x128xf32>
    %239 = arith.addf %238, %64 : vector<8x128xf32>
    %240 = vector.extract_strided_slice %239 {offsets = [0, 0], sizes = [8, 96], strides = [1, 1]} : vector<8x128xf32> to vector<8x96xf32>
    %241 = arith.negf %240 : vector<8x96xf32>
    %242 = math.exp %241 : vector<8x96xf32>
    %cst_50 = arith.constant 1.000000e+00 : f32
    %243 = vector.broadcast %cst_50 : f32 to vector<8x96xf32>
    %244 = arith.addf %243, %242 : vector<8x96xf32>
    %245 = arith.divf %243, %244 : vector<8x96xf32>
    %246 = vector.extract_strided_slice %239 {offsets = [0, 96], sizes = [8, 32], strides = [1, 1]} : vector<8x128xf32> to vector<8x32xf32>
    %247 = math.tanh %246 : vector<8x32xf32>
    %248 = vector.extract_strided_slice %245 {offsets = [0, 32], sizes = [8, 32], strides = [1, 1]} : vector<8x96xf32> to vector<8x32xf32>
    %249 = arith.mulf %248, %214 : vector<8x32xf32>
    %250 = vector.extract_strided_slice %245 {offsets = [0, 0], sizes = [8, 32], strides = [1, 1]} : vector<8x96xf32> to vector<8x32xf32>
    %251 = arith.mulf %250, %247 : vector<8x32xf32>
    %252 = arith.addf %249, %251 : vector<8x32xf32>
    %253 = vector.extract_strided_slice %245 {offsets = [0, 64], sizes = [8, 32], strides = [1, 1]} : vector<8x96xf32> to vector<8x32xf32>
    %254 = math.tanh %252 : vector<8x32xf32>
    %255 = arith.mulf %253, %254 : vector<8x32xf32>
    %256 = vector.extract_strided_slice %59 {offsets = [40, 0], sizes = [8, 128], strides = [1, 1]} : vector<64x128xf32> to vector<8x128xf32>
    %cst_51 = arith.constant dense<0.000000e+00> : vector<8x128xf32>
    %257 = tpu.matmul %236, %60, %cst_51 {dimension_numbers = #tpu.dot_dimension_numbers<[1], [0], [0], [1], [0, 0, 1, 1], [], []>} : vector<8x32xf32>, vector<32x128xf32>, vector<8x128xf32> -> vector<8x128xf32>
    %258 = arith.addf %256, %257 : vector<8x128xf32>
    %259 = vector.extract_strided_slice %258 {offsets = [0, 0], sizes = [8, 96], strides = [1, 1]} : vector<8x128xf32> to vector<8x96xf32>
    %260 = arith.negf %259 : vector<8x96xf32>
    %261 = math.exp %260 : vector<8x96xf32>
    %cst_52 = arith.constant 1.000000e+00 : f32
    %262 = vector.broadcast %cst_52 : f32 to vector<8x96xf32>
    %263 = arith.addf %262, %261 : vector<8x96xf32>
    %264 = arith.divf %262, %263 : vector<8x96xf32>
    %265 = vector.extract_strided_slice %258 {offsets = [0, 96], sizes = [8, 32], strides = [1, 1]} : vector<8x128xf32> to vector<8x32xf32>
    %266 = math.tanh %265 : vector<8x32xf32>
    %267 = vector.extract_strided_slice %264 {offsets = [0, 32], sizes = [8, 32], strides = [1, 1]} : vector<8x96xf32> to vector<8x32xf32>
    %268 = arith.mulf %267, %233 : vector<8x32xf32>
    %269 = vector.extract_strided_slice %264 {offsets = [0, 0], sizes = [8, 32], strides = [1, 1]} : vector<8x96xf32> to vector<8x32xf32>
    %270 = arith.mulf %269, %266 : vector<8x32xf32>
    %271 = arith.addf %268, %270 : vector<8x32xf32>
    %272 = vector.extract_strided_slice %264 {offsets = [0, 64], sizes = [8, 32], strides = [1, 1]} : vector<8x96xf32> to vector<8x32xf32>
    %273 = math.tanh %271 : vector<8x32xf32>
    %274 = arith.mulf %272, %273 : vector<8x32xf32>
    %275 = tpu.concatenate %274, %255 in 1 : vector<8x32xf32>, vector<8x32xf32> -> vector<8x64xf32>
    %cst_53 = arith.constant dense<0.000000e+00> : vector<8x128xf32>
    %276 = tpu.matmul %275, %61, %cst_53 {dimension_numbers = #tpu.dot_dimension_numbers<[1], [0], [0], [1], [0, 0, 1, 1], [], []>} : vector<8x64xf32>, vector<64x128xf32>, vector<8x128xf32> -> vector<8x128xf32>
    %277 = arith.addf %276, %64 : vector<8x128xf32>
    %278 = vector.extract_strided_slice %277 {offsets = [0, 0], sizes = [8, 96], strides = [1, 1]} : vector<8x128xf32> to vector<8x96xf32>
    %279 = arith.negf %278 : vector<8x96xf32>
    %280 = math.exp %279 : vector<8x96xf32>
    %cst_54 = arith.constant 1.000000e+00 : f32
    %281 = vector.broadcast %cst_54 : f32 to vector<8x96xf32>
    %282 = arith.addf %281, %280 : vector<8x96xf32>
    %283 = arith.divf %281, %282 : vector<8x96xf32>
    %284 = vector.extract_strided_slice %277 {offsets = [0, 96], sizes = [8, 32], strides = [1, 1]} : vector<8x128xf32> to vector<8x32xf32>
    %285 = math.tanh %284 : vector<8x32xf32>
    %286 = vector.extract_strided_slice %283 {offsets = [0, 32], sizes = [8, 32], strides = [1, 1]} : vector<8x96xf32> to vector<8x32xf32>
    %287 = arith.mulf %286, %252 : vector<8x32xf32>
    %288 = vector.extract_strided_slice %283 {offsets = [0, 0], sizes = [8, 32], strides = [1, 1]} : vector<8x96xf32> to vector<8x32xf32>
    %289 = arith.mulf %288, %285 : vector<8x32xf32>
    %290 = arith.addf %287, %289 : vector<8x32xf32>
    %291 = vector.extract_strided_slice %283 {offsets = [0, 64], sizes = [8, 32], strides = [1, 1]} : vector<8x96xf32> to vector<8x32xf32>
    %292 = math.tanh %290 : vector<8x32xf32>
    %293 = arith.mulf %291, %292 : vector<8x32xf32>
    %294 = vector.extract_strided_slice %59 {offsets = [48, 0], sizes = [8, 128], strides = [1, 1]} : vector<64x128xf32> to vector<8x128xf32>
    %cst_55 = arith.constant dense<0.000000e+00> : vector<8x128xf32>
    %295 = tpu.matmul %274, %60, %cst_55 {dimension_numbers = #tpu.dot_dimension_numbers<[1], [0], [0], [1], [0, 0, 1, 1], [], []>} : vector<8x32xf32>, vector<32x128xf32>, vector<8x128xf32> -> vector<8x128xf32>
    %296 = arith.addf %294, %295 : vector<8x128xf32>
    %297 = vector.extract_strided_slice %296 {offsets = [0, 0], sizes = [8, 96], strides = [1, 1]} : vector<8x128xf32> to vector<8x96xf32>
    %298 = arith.negf %297 : vector<8x96xf32>
    %299 = math.exp %298 : vector<8x96xf32>
    %cst_56 = arith.constant 1.000000e+00 : f32
    %300 = vector.broadcast %cst_56 : f32 to vector<8x96xf32>
    %301 = arith.addf %300, %299 : vector<8x96xf32>
    %302 = arith.divf %300, %301 : vector<8x96xf32>
    %303 = vector.extract_strided_slice %296 {offsets = [0, 96], sizes = [8, 32], strides = [1, 1]} : vector<8x128xf32> to vector<8x32xf32>
    %304 = math.tanh %303 : vector<8x32xf32>
    %305 = vector.extract_strided_slice %302 {offsets = [0, 32], sizes = [8, 32], strides = [1, 1]} : vector<8x96xf32> to vector<8x32xf32>
    %306 = arith.mulf %305, %271 : vector<8x32xf32>
    %307 = vector.extract_strided_slice %302 {offsets = [0, 0], sizes = [8, 32], strides = [1, 1]} : vector<8x96xf32> to vector<8x32xf32>
    %308 = arith.mulf %307, %304 : vector<8x32xf32>
    %309 = arith.addf %306, %308 : vector<8x32xf32>
    %310 = vector.extract_strided_slice %302 {offsets = [0, 64], sizes = [8, 32], strides = [1, 1]} : vector<8x96xf32> to vector<8x32xf32>
    %311 = math.tanh %309 : vector<8x32xf32>
    %312 = arith.mulf %310, %311 : vector<8x32xf32>
    %313 = tpu.concatenate %312, %293 in 1 : vector<8x32xf32>, vector<8x32xf32> -> vector<8x64xf32>
    %cst_57 = arith.constant dense<0.000000e+00> : vector<8x128xf32>
    %314 = tpu.matmul %313, %61, %cst_57 {dimension_numbers = #tpu.dot_dimension_numbers<[1], [0], [0], [1], [0, 0, 1, 1], [], []>} : vector<8x64xf32>, vector<64x128xf32>, vector<8x128xf32> -> vector<8x128xf32>
    %315 = arith.addf %314, %64 : vector<8x128xf32>
    %316 = vector.extract_strided_slice %315 {offsets = [0, 0], sizes = [8, 96], strides = [1, 1]} : vector<8x128xf32> to vector<8x96xf32>
    %317 = arith.negf %316 : vector<8x96xf32>
    %318 = math.exp %317 : vector<8x96xf32>
    %cst_58 = arith.constant 1.000000e+00 : f32
    %319 = vector.broadcast %cst_58 : f32 to vector<8x96xf32>
    %320 = arith.addf %319, %318 : vector<8x96xf32>
    %321 = arith.divf %319, %320 : vector<8x96xf32>
    %322 = vector.extract_strided_slice %315 {offsets = [0, 96], sizes = [8, 32], strides = [1, 1]} : vector<8x128xf32> to vector<8x32xf32>
    %323 = math.tanh %322 : vector<8x32xf32>
    %324 = vector.extract_strided_slice %321 {offsets = [0, 32], sizes = [8, 32], strides = [1, 1]} : vector<8x96xf32> to vector<8x32xf32>
    %325 = arith.mulf %324, %290 : vector<8x32xf32>
    %326 = vector.extract_strided_slice %321 {offsets = [0, 0], sizes = [8, 32], strides = [1, 1]} : vector<8x96xf32> to vector<8x32xf32>
    %327 = arith.mulf %326, %323 : vector<8x32xf32>
    %328 = arith.addf %325, %327 : vector<8x32xf32>
    %329 = vector.extract_strided_slice %321 {offsets = [0, 64], sizes = [8, 32], strides = [1, 1]} : vector<8x96xf32> to vector<8x32xf32>
    %330 = math.tanh %328 : vector<8x32xf32>
    %331 = arith.mulf %329, %330 : vector<8x32xf32>
    %332 = vector.extract_strided_slice %59 {offsets = [56, 0], sizes = [8, 128], strides = [1, 1]} : vector<64x128xf32> to vector<8x128xf32>
    %cst_59 = arith.constant dense<0.000000e+00> : vector<8x128xf32>
    %333 = tpu.matmul %312, %60, %cst_59 {dimension_numbers = #tpu.dot_dimension_numbers<[1], [0], [0], [1], [0, 0, 1, 1], [], []>} : vector<8x32xf32>, vector<32x128xf32>, vector<8x128xf32> -> vector<8x128xf32>
    %334 = arith.addf %332, %333 : vector<8x128xf32>
    %335 = vector.extract_strided_slice %334 {offsets = [0, 0], sizes = [8, 96], strides = [1, 1]} : vector<8x128xf32> to vector<8x96xf32>
    %336 = arith.negf %335 : vector<8x96xf32>
    %337 = math.exp %336 : vector<8x96xf32>
    %cst_60 = arith.constant 1.000000e+00 : f32
    %338 = vector.broadcast %cst_60 : f32 to vector<8x96xf32>
    %339 = arith.addf %338, %337 : vector<8x96xf32>
    %340 = arith.divf %338, %339 : vector<8x96xf32>
    %341 = vector.extract_strided_slice %334 {offsets = [0, 96], sizes = [8, 32], strides = [1, 1]} : vector<8x128xf32> to vector<8x32xf32>
    %342 = math.tanh %341 : vector<8x32xf32>
    %343 = vector.extract_strided_slice %340 {offsets = [0, 32], sizes = [8, 32], strides = [1, 1]} : vector<8x96xf32> to vector<8x32xf32>
    %344 = arith.mulf %343, %309 : vector<8x32xf32>
    %345 = vector.extract_strided_slice %340 {offsets = [0, 0], sizes = [8, 32], strides = [1, 1]} : vector<8x96xf32> to vector<8x32xf32>
    %346 = arith.mulf %345, %342 : vector<8x32xf32>
    %347 = arith.addf %344, %346 : vector<8x32xf32>
    %348 = vector.extract_strided_slice %340 {offsets = [0, 64], sizes = [8, 32], strides = [1, 1]} : vector<8x96xf32> to vector<8x32xf32>
    %349 = math.tanh %347 : vector<8x32xf32>
    %350 = arith.mulf %348, %349 : vector<8x32xf32>
    %351 = tpu.concatenate %350, %331 in 1 : vector<8x32xf32>, vector<8x32xf32> -> vector<8x64xf32>
    %cst_61 = arith.constant dense<0.000000e+00> : vector<8x128xf32>
    %352 = tpu.matmul %351, %61, %cst_61 {dimension_numbers = #tpu.dot_dimension_numbers<[1], [0], [0], [1], [0, 0, 1, 1], [], []>} : vector<8x64xf32>, vector<64x128xf32>, vector<8x128xf32> -> vector<8x128xf32>
    %353 = arith.addf %352, %64 : vector<8x128xf32>
    %354 = vector.extract_strided_slice %353 {offsets = [0, 0], sizes = [8, 96], strides = [1, 1]} : vector<8x128xf32> to vector<8x96xf32>
    %355 = arith.negf %354 : vector<8x96xf32>
    %356 = math.exp %355 : vector<8x96xf32>
    %cst_62 = arith.constant 1.000000e+00 : f32
    %357 = vector.broadcast %cst_62 : f32 to vector<8x96xf32>
    %358 = arith.addf %357, %356 : vector<8x96xf32>
    %359 = arith.divf %357, %358 : vector<8x96xf32>
    %360 = vector.extract_strided_slice %353 {offsets = [0, 96], sizes = [8, 32], strides = [1, 1]} : vector<8x128xf32> to vector<8x32xf32>
    %361 = math.tanh %360 : vector<8x32xf32>
    %362 = vector.extract_strided_slice %359 {offsets = [0, 32], sizes = [8, 32], strides = [1, 1]} : vector<8x96xf32> to vector<8x32xf32>
    %363 = arith.mulf %362, %328 : vector<8x32xf32>
    %364 = vector.extract_strided_slice %359 {offsets = [0, 0], sizes = [8, 32], strides = [1, 1]} : vector<8x96xf32> to vector<8x32xf32>
    %365 = arith.mulf %364, %361 : vector<8x32xf32>
    %366 = arith.addf %363, %365 : vector<8x32xf32>
    %367 = vector.extract_strided_slice %359 {offsets = [0, 64], sizes = [8, 32], strides = [1, 1]} : vector<8x96xf32> to vector<8x32xf32>
    %368 = math.tanh %366 : vector<8x32xf32>
    %369 = arith.mulf %367, %368 : vector<8x32xf32>
    %370 = tpu.concatenate %350, %369 in 1 : vector<8x32xf32>, vector<8x32xf32> -> vector<8x64xf32>
    %c0_63 = arith.constant 0 : index
    %c0_64 = arith.constant 0 : index
    %371 = vector.load %arg9[%c0_63, %c0_64] : memref<1x64xf32, #tpu.memory_space<vmem>>, vector<1x64xf32>
    %372 = vector.broadcast %371 : vector<1x64xf32> to vector<8x64xf32>
    %373 = arith.mulf %370, %372 : vector<8x64xf32>
    %cst_65 = arith.constant dense<0.000000e+00> : vector<8xf32>
    %374 = vector.multi_reduction <add>, %373, %cst_65 [1] : vector<8x64xf32> to vector<8xf32>
    %375 = vector.shape_cast %374 : vector<8xf32> to vector<8x1xf32>
    %c0_66 = arith.constant 0 : index
    %c0_67 = arith.constant 0 : index
    %376 = vector.load %arg10[%c0_66, %c0_67] : memref<1x1xf32, #tpu.memory_space<vmem>>, vector<1x1xf32>
    %377 = vector.broadcast %376 : vector<1x1xf32> to vector<8x1xf32>
    %378 = arith.addf %375, %377 : vector<8x1xf32>
    %c0_68 = arith.constant 0 : index
    %c0_69 = arith.constant 0 : index
    %379 = vector.load %arg11[%c0_68, %c0_69] : memref<8x1xf32, #tpu.memory_space<vmem>>, vector<8x1xf32>
    tpu.vector_store %arg11[%c0_68, %c0_69], %378 {strides = array<i32>} : memref<8x1xf32, #tpu.memory_space<vmem>>, vector<8x1xf32>,
    return
  }
  func.func @transform_0(%arg0: i32) -> (i32, i32, i32) {
    %c0_i32 = arith.constant 0 : i32
    %c0_i32_0 = arith.constant 0 : i32
    %c0_i32_1 = arith.constant 0 : i32
    return %c0_i32, %arg0, %c0_i32_0 : i32, i32, i32
  }
  func.func @transform_1(%arg0: i32) -> (i32, i32) {
    %c0_i32 = arith.constant 0 : i32
    %c0_i32_0 = arith.constant 0 : i32
    %c0_i32_1 = arith.constant 0 : i32
    return %c0_i32, %c0_i32_0 : i32, i32
  }
  func.func @transform_2(%arg0: i32) -> (i32, i32) {
    %c0_i32 = arith.constant 0 : i32
    %c0_i32_0 = arith.constant 0 : i32
    %c0_i32_1 = arith.constant 0 : i32
    return %c0_i32, %c0_i32_0 : i32, i32
  }
  func.func @transform_3(%arg0: i32) -> (i32, i32) {
    %c0_i32 = arith.constant 0 : i32
    %c0_i32_0 = arith.constant 0 : i32
    %c0_i32_1 = arith.constant 0 : i32
    return %c0_i32, %c0_i32_0 : i32, i32
  }
  func.func @transform_4(%arg0: i32) -> (i32, i32) {
    %c0_i32 = arith.constant 0 : i32
    %c0_i32_0 = arith.constant 0 : i32
    %c0_i32_1 = arith.constant 0 : i32
    return %c0_i32, %c0_i32_0 : i32, i32
  }
  func.func @transform_5(%arg0: i32) -> (i32, i32) {
    %c0_i32 = arith.constant 0 : i32
    %c0_i32_0 = arith.constant 0 : i32
    %c0_i32_1 = arith.constant 0 : i32
    return %c0_i32, %c0_i32_0 : i32, i32
  }
  func.func @transform_6(%arg0: i32) -> (i32, i32) {
    %c0_i32 = arith.constant 0 : i32
    %c0_i32_0 = arith.constant 0 : i32
    %c0_i32_1 = arith.constant 0 : i32
    return %c0_i32, %c0_i32_0 : i32, i32
  }
  func.func @transform_7(%arg0: i32) -> (i32, i32) {
    %c0_i32 = arith.constant 0 : i32
    %c0_i32_0 = arith.constant 0 : i32
    %c0_i32_1 = arith.constant 0 : i32
    return %c0_i32, %c0_i32_0 : i32, i32
  }
  func.func @transform_8(%arg0: i32) -> (i32, i32) {
    %c0_i32 = arith.constant 0 : i32
    %c0_i32_0 = arith.constant 0 : i32
    %c0_i32_1 = arith.constant 0 : i32
    return %c0_i32, %c0_i32_0 : i32, i32
  }
  func.func @transform_9(%arg0: i32) -> (i32, i32) {
    %c0_i32 = arith.constant 0 : i32
    %c0_i32_0 = arith.constant 0 : i32
    %c0_i32_1 = arith.constant 0 : i32
    return %c0_i32, %c0_i32_0 : i32, i32
  }
  func.func @transform_10(%arg0: i32) -> (i32, i32) {
    %c0_i32 = arith.constant 0 : i32
    %c0_i32_0 = arith.constant 0 : i32
    return %arg0, %c0_i32 : i32, i32
  }
}

</mosaic_0001>

<bundles_post_ra>
// kernel: lstm_model_forward.1
= control target key start
LH: loop header
LB: loop body
LE: loop exit
PB: predicated region body
PF: predicated region fallthrough
CT: control target
= control target key end

     0   :  { %v2684_v0 = vmov 0   ;;  %v2685_v7 = vmov 0.0|0.0   ;;  %vm2686_vm0 = vmmov 0   ;;  %v2687_v16 = vmov 0.0   ;;  %s2688_s15 = smov 32   ;;  %s2689_s20 = smov 64   ;;  %s3184_s0 = inlined_call_operand.vmem [shape: f32[8,8,1], index: 0, kind: input, shape index: {}]   ;;  %s3185_s3 = inlined_call_operand.vmem [shape: f32[32,128], index: 3, kind: input, shape index: {}]   ;;  %s3186_s4 = inlined_call_operand.vmem [shape: f32[32,128], index: 4, kind: input, shape index: {}]   ;;  %s3187_s1 = inlined_call_operand.vmem [shape: f32[1,32], index: 1, kind: input, shape index: {}]   ;;  %s3188_s2 = inlined_call_operand.vmem [shape: f32[1,32], index: 2, kind: input, shape index: {}]   ;;  %s3189_s5 = inlined_call_operand.vmem [shape: f32[1,128], index: 5, kind: input, shape index: {}]   ;;  %s3190_s6 = inlined_call_operand.vmem [shape: f32[64,128], index: 6, kind: input, shape index: {}]   ;;  %s3191_s7 = inlined_call_operand.vmem [shape: f32[1,128], index: 7, kind: input, shape index: {}]   ;;  %s3192_s9 = inlined_call_operand.<no memory space> [shape: f32[1,1], index: 9, kind: input, shape index: {}]   ;;  %s3193_s8 = inlined_call_operand.vmem [shape: f32[1,64], index: 8, kind: input, shape index: {}]   ;;  %s3194_s10 = inlined_call_operand.vmem [shape: f32[8,1], index: 10, kind: output, shape index: {}]  }
   0x1   :  { %2537 = vset.pattern.permute.xlu0 %v2684_v0  ;;  %v51_v1 = vld [vmem:[%s3184_s0] sm:$0xff]  ;;  %2538 = vset.pattern.permute.xlu1 %v2684_v0  ;;  %v1944_v2 = vld [vmem:[%s3184_s0 + $0x8] sm:$0xff]  ;;  %v132_v5 = vld [vmem:[%s3185_s3 + $0x10] sm:$0xff]  ;;  %vm141_vm1 = vcmask 261120   ;;  %vm393_vm2 = vcmask 523264   ;;  %vm1936_vm3 = vcmask 7168  }
   0x2   :  { %54 = vperm.xlu0 %2537, %v51_v1   ;;  %v130_v3 = vld [vmem:[%s3185_s3] sm:$0xff]  ;;  %v131_v4 = vld [vmem:[%s3185_s3 + $0x8] sm:$0xff]  ;;  %2386 = vmatprep.subr.bf16.mxu1 %v2685_v7  ;;  %v133_v10 = vld [vmem:[%s3185_s3 + $0x18] sm:$0xff] }
   0x3   :  { %v2378_v6 = vpack.c.bf16 %v131_v4, %v130_v3  ;;  %v271_v8 = vld [vmem:[%s3186_s4] sm:$0xff]  ;;  %v272_v9 = vld [vmem:[%s3186_s4 + $0x8] sm:$0xff]  ;;  %v2382_v12 = vpack.c.bf16 %v133_v10, %v132_v5  ;;  %v273_v13 = vld [vmem:[%s3186_s4 + $0x10] sm:$0xff]  ;;  %2146 = vmatprep.mubr.msk.f32.mxu1 %vm2686_vm0, %v2687_v16 }
   0x4   :  { %v2771_v11 = vpack.c.bf16 %v272_v9, %v271_v8  ;;  %v274_v14 = vld [vmem:[%s3186_s4 + $0x18] sm:$0xff]  ;;  %v2798_v17 = vld [vmem:[%s3187_s1] ss:$0 sm:$0xff]  ;;  %v1945_v41 = vld [vmem:[%s3184_s0 + $0x10] sm:$0xff] }
   0x5   :  { %2379 = vmatprep.subr.bf16.mxu0 %v2378_v6  ;;  %v2781_v15 = vpack.c.bf16 %v274_v14, %v273_v13  ;;  %v2803_v18 = vld [vmem:[%s3188_s2] ss:$0 sm:$0xff]  ;;  %v1949_v43 = vld [vmem:[%s3184_s0 + $0x30] sm:$0xff]  ;;  %v1946_v48 = vld [vmem:[%s3184_s0 + $0x18] sm:$0xff] }
   0x6   :  { %64 = vperm.xlu0 %2537, %v1944_v2   ;;  %2381 = vmatpush3.bf16.msra.mxu0 %v2378_v6  ;;  %v2814_v29 = vld [vmem:[%s3189_s5] ss:$0 sm:$0xff]  ;;  %v1948_v51 = vld [vmem:[%s3184_s0 + $0x28] sm:$0xff]  ;;  %v1950_v53 = vld [vmem:[%s3184_s0 + $0x38] sm:$0xff] }
   0x7   :  { %2388 = vmatpush3.bf16.msra.mxu1 %v2771_v11  ;;  %2383 = vmatprep.subr.bf16.mxu0 %v2382_v12  ;;  %v1947_v42 = vld [vmem:[%s3184_s0 + $0x20] sm:$0xff]  ;;  %v276_v56 = vld [vmem:[%s3190_s6 + $0x8] sm:$0xff]  ;;  %v277_v57 = vld [vmem:[%s3190_s6 + $0x10] sm:$0xff] }
   0x8   :  { %2389 = vmatprep.subr.bf16.mxu1 %v2685_v7  ;;  %v275_v55 = vld [vmem:[%s3190_s6] sm:$0xff]  ;;  %v278_v59 = vld [vmem:[%s3190_s6 + $0x18] sm:$0xff]  ;;  %v280_v62 = vld [vmem:[%s3190_s6 + $0x28] sm:$0xff] }
   0x9   :  { %v2855_v58 = vpack.c.bf16 %v276_v56, %v275_v55  ;;  %v2861_v60 = vpack.c.bf16 %v278_v59, %v277_v57  ;;  %v279_v61 = vld [vmem:[%s3190_s6 + $0x20] sm:$0xff]  ;;  %v281_v0 = vld [vmem:[%s3190_s6 + $0x30] sm:$0xff]  ;;  %v282_v1 = vld [vmem:[%s3190_s6 + $0x38] sm:$0xff] }
   0xa   :  { %2385 = vmatpush3.bf16.msra.mxu0 %v2382_v12  ;;  %v2871_v63 = vpack.c.bf16 %v280_v62, %v279_v61  ;;  %v2881_v2 = vpack.c.bf16 %v282_v1, %v281_v0 }
   0xb   :  { %2392 = vmatprep.subr.bf16.mxu0 %v2685_v7  ;;  %2391 = vmatpush3.bf16.msra.mxu1 %v2781_v15 }
   0xc   :  { %2404 = vmatprep.subr.bf16.mxu1 %v2685_v7 }
   0xe   :  { %2147 = vmatmul.mubr.f32.vlgmr.msra.gmra.mrb[0].mxu1 %v2687_v16 }
   0xf   :  { %2406 = vmatpush3.bf16.msra.mxu1 %v2771_v11  ;;  %2176 = vmatprep.mubr.msk.f32.mxu1 %vm2686_vm0, %v2687_v16 }
  0x10   :  { %2407 = vmatprep.subr.bf16.mxu1 %v2685_v7 }
  0x13   :  { %2409 = vmatpush3.bf16.msra.mxu1 %v2781_v15 }
  0x14   :  { %2410 = vmatprep.subr.bf16.mxu1 %v2685_v7 }
  0x81   :  { %v55_v19 = vpop.permute.xlu0 %54 }
  0x82   :  { %v57_v20 = vmul.f32 %v2798_v17, %v55_v19 }
  0x84   :  { %v58_v21 = vadd.f32 %v2803_v18, %v57_v20 }
  0x85   :  { %v65_v22 = vpop.permute.xlu0 %64 }
  0x86   :  { %2539 = vtanh.f32 %v58_v21  ;;  %v67_v23 = vmul.f32 %v2798_v17, %v65_v22 }
  0x88   :  { %v68_v24 = vadd.f32 %v2803_v18, %v67_v23 }
  0x8a   :  { %2541 = vtanh.f32 %v68_v24 }
  0x90   :  { %v2540_v25 = vpop.eup %2539 }
  0x91   :  { %2126 = vmatprep.mubr.msk.f32.mxu0 %vm141_vm1, %v2540_v25 }
  0x94   :  { %v2542_v26 = vpop.eup %2541 }
  0x95   :  { %2127 = vmatmul.mubr.msk.f32.vlgmr.msra.gmra.mrb[0].mxu0 %vm141_vm1, %v2542_v26 }
  0x96   :  { %2394 = vmatpush3.bf16.msra.mxu0 %v2855_v58 }
  0x97   :  { %2395 = vmatprep.subr.bf16.mxu0 %v2685_v7 }
  0x9a   :  { %2397 = vmatpush3.bf16.msra.mxu0 %v2861_v60 }
  0x9b   :  { %2398 = vmatprep.subr.bf16.mxu0 %v2685_v7 }
  0x9e   :  { %2400 = vmatpush3.bf16.msra.mxu0 %v2871_v63 }
  0x9f   :  { %2401 = vmatprep.subr.bf16.mxu0 %v2685_v7 }
  0xa2   :  { %2403 = vmatpush3.bf16.msra.mxu0 %v2881_v2 }
  0xa3   :  { %2422 = vmatprep.subr.bf16.mxu0 %v2685_v7 }
  0xe1   :  { %v359_v27 = vpop.f32.mrb[0].mxu1 }
  0xe2   :  { %v2148_v28 = vpop.f32.mrb[1].mxu1 }
 0x168   :  { %v2816_v30 = vpop.f32.mrb[0].mxu0 }
 0x169   :  { %v232_v31 = vpop.f32.mrb[1].mxu0 }
 0x16a   :  { %v233_v32 = vadd.f32 %v2814_v29, %v232_v31 }
 0x16c   :  { %v363_v33 = vadd.f32 %v359_v27, %v233_v32 }
 0x16e   :  { %2543 = vtanh.f32 %v363_v33  ;;  %v1961_v35 = vmul.f32 -1.442695, %v363_v33 }
 0x170   :  { %2545 = vpow2.f32 %v1961_v35 }
 0x178   :  { %v2544_v34 = vpop.eup %2543 }
 0x179   :  { %373 = vrot.lane.b32.xlu1 %v2544_v34, %s2688_s15 }
 0x17a   :  { %v2546_v36 = vpop.eup %2545 }
 0x17b   :  { %v367_v37 = vadd.f32 1.0, %v2546_v36 }
 0x17d   :  { %2547 = vrcp.f32 %v367_v37 }
 0x187   :  { %v2548_v38 = vpop.eup %2547 }
 0x188   :  { %v371_v44 = vmul.f32 0.0, %v2548_v38 }
 0x1eb   :  { %v374_v39 = vpop.permute.xlu1 %373 }
 0x1ec   :  { %v376_v40 = vmul.f32 %v2548_v38, %v374_v39  ;;  %v238_v39 = vadd.f32 %v2816_v30, %v2814_v29 }
 0x1ee   :  { %378 = vrot.lane.b32.xlu1 %v376_v40, %s2688_s15  ;;  %v2940_v40 = vld [vmem:[%s3191_s7] ss:$0 sm:$0xff]  ;;  %s2690_s7 = smov 96  }
 0x1f2   :  { %74 = vperm.xlu1 %2538, %v1945_v41  }
 0x1f6   :  { %94 = vperm.xlu1 %2538, %v1947_v42  }
 0x1fa   :  { %114 = vperm.xlu1 %2538, %v1949_v43  }
 0x260   :  { %v379_v45 = vpop.permute.xlu1 %378 }
 0x261   :  { %v2830_v46 = vadd.f32 %v379_v45, %v371_v44 }
 0x263   :  { %2549 = vtanh.f32 %v2830_v46 }
 0x26d   :  { %v2550_v47 = vpop.eup %2549 }
 0x26e   :  { %384 = vrot.lane.b32.xlu0 %v2550_v47, %s2688_s15 }
 0x271   :  { %v75_v49 = vpop.permute.xlu1 %74 }
 0x272   :  { %84 = vperm.xlu0 %2537, %v1946_v48   ;;  %v77_v50 = vmul.f32 %v2798_v17, %v75_v49 }
 0x274   :  { %v78_v52 = vadd.f32 %v2803_v18, %v77_v50 }
 0x275   :  { %v95_v5 = vpop.permute.xlu1 %94 }
 0x276   :  { %104 = vperm.xlu0 %2537, %v1948_v51   ;;  %2551 = vtanh.f32 %v78_v52  ;;  %v97_v6 = vmul.f32 %v2798_v17, %v95_v5 }
 0x278   :  { %v98_v10 = vadd.f32 %v2803_v18, %v97_v6 }
 0x279   :  { %v115_v8 = vpop.permute.xlu1 %114 }
 0x27a   :  { %124 = vperm.xlu0 %2537, %v1950_v53   ;;  %v117_v12 = vmul.f32 %v2798_v17, %v115_v8  ;;  %2553 = vtanh.f32 %v98_v10 }
 0x27c   :  { %v118_v20 = vadd.f32 %v2803_v18, %v117_v12 }
 0x280   :  { %v2552_v54 = vpop.eup %2551 }
 0x281   :  { %2129 = vmatprep.mubr.msk.f32.mxu0 %vm141_vm1, %v2552_v54 }
 0x284   :  { %v2554_v26 = vpop.eup %2553 }
 0x2e0   :  { %v385_v3 = vpop.permute.xlu0 %384 }
 0x2e1   :  { %v387_v4 = vmul.f32 %v2548_v38, %v385_v3 }
 0x2e3   :  { %389 = vrot.lane.b32.xlu1 %v387_v4, %s2689_s20 }
 0x2f1   :  { %v85_v9 = vpop.permute.xlu0 %84 }
 0x2f2   :  { %v87_v13 = vmul.f32 %v2798_v17, %v85_v9 }
 0x2f4   :  { %v88_v14 = vadd.f32 %v2803_v18, %v87_v13 }
 0x2f5   :  { %v105_v19 = vpop.permute.xlu0 %104 }
 0x2f6   :  { %2555 = vtanh.f32 %v88_v14  ;;  %v107_v21 = vmul.f32 %v2798_v17, %v105_v19 }
 0x2f7   :  { %2557 = vtanh.f32 %v118_v20 }
 0x2f8   :  { %v108_v22 = vadd.f32 %v2803_v18, %v107_v21 }
 0x2f9   :  { %v125_v23 = vpop.permute.xlu0 %124 }
 0x2fa   :  { %2559 = vtanh.f32 %v108_v22  ;;  %v127_v24 = vmul.f32 %v2798_v17, %v125_v23 }
 0x2fc   :  { %v128_v25 = vadd.f32 %v2803_v18, %v127_v24 }
 0x2fe   :  { %2561 = vtanh.f32 %v128_v25 }
 0x300   :  { %v2556_v27 = vpop.eup %2555 }
 0x301   :  { %2130 = vmatmul.mubr.msk.f32.gmra.mrb[2].mxu0 %vm141_vm1, %v2556_v27  ;;  %v2558_v28 = vpop.eup %2557 }
 0x302   :  { %2132 = vmatprep.mubr.msk.f32.mxu0 %vm141_vm1, %v2554_v26 }
 0x304   :  { %v2560_v31 = vpop.eup %2559 }
 0x305   :  { %2133 = vmatmul.mubr.msk.f32.gmra.mrb[4].mxu0 %vm141_vm1, %v2560_v31 }
 0x306   :  { %2135 = vmatprep.mubr.msk.f32.mxu0 %vm141_vm1, %v2558_v28 }
 0x308   :  { %v2562_v32 = vpop.eup %2561 }
 0x309   :  { %2136 = vmatmul.mubr.msk.f32.gmra.mrb[6].mxu0 %vm141_vm1, %v2562_v32 }
 0x30a   :  { %2165 = vmatprep.mubr.msk.f32.mxu0 %vm2686_vm0, %v2687_v16 }
 0x355   :  { %v390_v17 = vpop.permute.xlu1 %389 }
 0x356   :  { %v392_v18 = vsel %vm141_vm1, %v390_v17, 0.0  ;;  %2177 = vmatmul.mubr.msk.f32.vlgmr.msra.gmra.mrb[2].mxu1 %vm141_vm1, %v390_v17 }
 0x357   :  { %2166 = vmatmul.mubr.msk.f32.vlgmr.msra.gmra.mrb[8].mxu0 %vm393_vm2, %v392_v18  ;;  %2412 = vmatpush3.bf16.msra.mxu1 %v2855_v58 }
 0x358   :  { %2413 = vmatprep.subr.bf16.mxu1 %v2685_v7  ;;  %2424 = vmatpush3.bf16.msra.mxu0 %v2771_v11 }
 0x359   :  { %2425 = vmatprep.subr.bf16.mxu0 %v2685_v7  ;;  %2206 = vmatprep.mubr.msk.f32.mxu0 %vm2686_vm0, %v2687_v16 }
 0x35a   :  { %2195 = vmatprep.mubr.msk.f32.mxu1 %vm2686_vm0, %v2687_v16 }
 0x35b   :  { %2415 = vmatpush3.bf16.msra.mxu1 %v2861_v60 }
 0x35c   :  { %2416 = vmatprep.subr.bf16.mxu1 %v2685_v7  ;;  %2427 = vmatpush3.bf16.msra.mxu0 %v2781_v15 }
 0x35d   :  { %2428 = vmatprep.subr.bf16.mxu0 %v2685_v7 }
 0x35f   :  { %2418 = vmatpush3.bf16.msra.mxu1 %v2871_v63 }
 0x360   :  { %2419 = vmatprep.subr.bf16.mxu1 %v2685_v7 }
 0x363   :  { %2421 = vmatpush3.bf16.msra.mxu1 %v2881_v2 }
 0x364   :  { %2440 = vmatprep.subr.bf16.mxu1 %v2685_v7 }
 0x3d4   :  { %v2923_v33 = vpop.f32.mrb[2].mxu0 }
 0x3d5   :  { %v2925_v34 = vpop.f32.mrb[3].mxu0 }
 0x3d6   :  { %v243_v21 = vadd.f32 %v2814_v29, %v2925_v34 }
 0x3d8   :  { %v2927_v35 = vpop.f32.mrb[4].mxu0 }
 0x3d9   :  { %v2929_v36 = vpop.f32.mrb[5].mxu0 }
 0x3dc   :  { %v2931_v37 = vpop.f32.mrb[6].mxu0 }
 0x3dd   :  { %v2933_v38 = vpop.f32.mrb[7].mxu0 }
 0x429   :  { %v559_v41 = vpop.f32.mrb[2].mxu1 }
 0x42a   :  { %v563_v42 = vadd.f32 %v559_v41, %v238_v39  ;;  %v463_v43 = vpop.f32.mrb[8].mxu0  ;;  %v2178_v44 = vpop.f32.mrb[3].mxu1 }
 0x42b   :  { %v464_v45 = vadd.f32 %v2940_v40, %v463_v43  ;;  %v2167_v47 = vpop.f32.mrb[9].mxu0 }
 0x42c   :  { %2563 = vtanh.f32 %v563_v42  ;;  %v1965_v30 = vmul.f32 -1.442695, %v563_v42 }
 0x42d   :  { %2565 = vtanh.f32 %v464_v45  ;;  %v1963_v50 = vmul.f32 -1.442695, %v464_v45 }
 0x42e   :  { %2567 = vpow2.f32 %v1965_v30 }
 0x42f   :  { %2569 = vpow2.f32 %v1963_v50 }
 0x436   :  { %v2564_v48 = vpop.eup %2563 }
 0x437   :  { %v2566_v49 = vpop.eup %2565  ;;  %573 = vrot.lane.b32.xlu1 %v2564_v48, %s2688_s15 }
 0x438   :  { %476 = vrot.lane.b32.xlu0 %v2566_v49, %s2688_s15  ;;  %v2568_v51 = vpop.eup %2567 }
 0x439   :  { %v2570_v52 = vpop.eup %2569  ;;  %v567_v53 = vadd.f32 1.0, %v2568_v51 }
 0x43a   :  { %v470_v54 = vadd.f32 1.0, %v2570_v52 }
 0x43b   :  { %2571 = vrcp.f32 %v567_v53 }
 0x43c   :  { %2573 = vrcp.f32 %v470_v54 }
 0x445   :  { %v2572_v55 = vpop.eup %2571 }
 0x446   :  { %v2574_v57 = vpop.eup %2573  ;;  %v571_v0 = vmul.f32 %v2572_v55, %v2830_v46 }
 0x447   :  { %v474_v3 = vmul.f32 0.0, %v2574_v57 }
 0x4a9   :  { %v574_v56 = vpop.permute.xlu1 %573 }
 0x4aa   :  { %v576_v59 = vmul.f32 %v2572_v55, %v574_v56  ;;  %v477_v61 = vpop.permute.xlu0 %476 }
 0x4ab   :  { %v479_v62 = vmul.f32 %v2574_v57, %v477_v61 }
 0x4ac   :  { %578 = vrot.lane.b32.xlu1 %v576_v59, %s2688_s15 }
 0x4ad   :  { %481 = vrot.lane.b32.xlu0 %v479_v62, %s2688_s15 }
 0x51e   :  { %v579_v1 = vpop.permute.xlu1 %578 }
 0x51f   :  { %v2948_v4 = vadd.f32 %v579_v1, %v571_v0  ;;  %v482_v5 = vpop.permute.xlu0 %481 }
 0x520   :  { %v2950_v6 = vadd.f32 %v482_v5, %v474_v3  ;;  %v248_v3 = vadd.f32 %v2923_v33, %v2814_v29 }
 0x521   :  { %2575 = vtanh.f32 %v2948_v4 }
 0x522   :  { %2577 = vtanh.f32 %v2950_v6 }
 0x52b   :  { %v2576_v8 = vpop.eup %2575 }
 0x52c   :  { %v2578_v9 = vpop.eup %2577  ;;  %584 = vrot.lane.b32.xlu1 %v2576_v8, %s2688_s15 }
 0x52d   :  { %487 = vrot.lane.b32.xlu0 %v2578_v9, %s2688_s15 }
 0x59e   :  { %v585_v10 = vpop.permute.xlu1 %584 }
 0x59f   :  { %v587_v12 = vmul.f32 %v2572_v55, %v585_v10  ;;  %v488_v46 = vpop.permute.xlu0 %487 }
 0x5a0   :  { %v490_v13 = vmul.f32 %v2574_v57, %v488_v46 }
 0x5a1   :  { %589 = vrot.lane.b32.xlu0 %v587_v12, %s2689_s20 }
 0x5a2   :  { %593 = vrot.lane.b32.xlu1 %v490_v13, %s2690_s7 }
 0x613   :  { %v590_v14 = vpop.permute.xlu0 %589 }
 0x614   :  { %v594_v19 = vpop.permute.xlu1 %593  ;;  %2207 = vmatmul.mubr.msk.f32.vlgmr.msra.gmra.mrb[10].mxu0 %vm141_vm1, %v590_v14 }
 0x615   :  { %v596_v20 = vsel %vm141_vm1, %v590_v14, %v594_v19  ;;  %2430 = vmatpush3.bf16.msra.mxu0 %v2855_v58  ;;  %2225 = vmatprep.mubr.msk.f32.mxu0 %vm2686_vm0, %v2687_v16 }
 0x616   :  { %2196 = vmatmul.mubr.msk.f32.vlgmr.msra.gmra.mrb[4].mxu1 %vm393_vm2, %v596_v20  ;;  %2431 = vmatprep.subr.bf16.mxu0 %v2685_v7 }
 0x617   :  { %2442 = vmatpush3.bf16.msra.mxu1 %v2771_v11  ;;  %2236 = vmatprep.mubr.msk.f32.mxu1 %vm2686_vm0, %v2687_v16 }
 0x618   :  { %2443 = vmatprep.subr.bf16.mxu1 %v2685_v7 }
 0x619   :  { %2433 = vmatpush3.bf16.msra.mxu0 %v2861_v60 }
 0x61a   :  { %2434 = vmatprep.subr.bf16.mxu0 %v2685_v7 }
 0x61b   :  { %2445 = vmatpush3.bf16.msra.mxu1 %v2781_v15 }
 0x61c   :  { %2446 = vmatprep.subr.bf16.mxu1 %v2685_v7 }
 0x61d   :  { %2436 = vmatpush3.bf16.msra.mxu0 %v2871_v63 }
 0x61e   :  { %2437 = vmatprep.subr.bf16.mxu0 %v2685_v7 }
 0x621   :  { %2439 = vmatpush3.bf16.msra.mxu0 %v2881_v2 }
 0x622   :  { %2458 = vmatprep.subr.bf16.mxu0 %v2685_v7 }
 0x6e7   :  { %v762_v22 = vpop.f32.mrb[10].mxu0 }
 0x6e8   :  { %v766_v23 = vadd.f32 %v762_v22, %v243_v21  ;;  %v2208_v24 = vpop.f32.mrb[11].mxu0 }
 0x6e9   :  { %v666_v25 = vpop.f32.mrb[4].mxu1 }
 0x6ea   :  { %2579 = vtanh.f32 %v766_v23  ;;  %v667_v26 = vadd.f32 %v2940_v40, %v666_v25  ;;  %v2197_v27 = vpop.f32.mrb[5].mxu1  ;;  %v1969_v32 = vmul.f32 -1.442695, %v766_v23 }
 0x6ec   :  { %2581 = vtanh.f32 %v667_v26  ;;  %v1967_v17 = vmul.f32 -1.442695, %v667_v26 }
 0x6ed   :  { %2583 = vpow2.f32 %v1969_v32 }
 0x6ee   :  { %2585 = vpow2.f32 %v1967_v17 }
 0x6f4   :  { %v2580_v28 = vpop.eup %2579 }
 0x6f5   :  { %776 = vrot.lane.b32.xlu1 %v2580_v28, %s2688_s15 }
 0x6f6   :  { %v2582_v31 = vpop.eup %2581 }
 0x6f7   :  { %679 = vrot.lane.b32.xlu0 %v2582_v31, %s2688_s15  ;;  %v2584_v18 = vpop.eup %2583 }
 0x6f8   :  { %v2586_v34 = vpop.eup %2585  ;;  %v770_v39 = vadd.f32 1.0, %v2584_v18 }
 0x6f9   :  { %v673_v41 = vadd.f32 1.0, %v2586_v34 }
 0x6fa   :  { %2587 = vrcp.f32 %v770_v39 }
 0x6fb   :  { %2589 = vrcp.f32 %v673_v41 }
 0x704   :  { %v2588_v42 = vpop.eup %2587 }
 0x705   :  { %v2590_v45 = vpop.eup %2589  ;;  %v774_v49 = vmul.f32 %v2588_v42, %v2948_v4 }
 0x706   :  { %v677_v51 = vmul.f32 %v2590_v45, %v2950_v6 }
 0x767   :  { %v777_v43 = vpop.permute.xlu1 %776 }
 0x768   :  { %v779_v44 = vmul.f32 %v2588_v42, %v777_v43 }
 0x769   :  { %v680_v47 = vpop.permute.xlu0 %679 }
 0x76a   :  { %781 = vrot.lane.b32.xlu1 %v779_v44, %s2688_s15  ;;  %v682_v48 = vmul.f32 %v2590_v45, %v680_v47 }
 0x76c   :  { %684 = vrot.lane.b32.xlu0 %v682_v48, %s2688_s15 }
 0x7dc   :  { %v782_v30 = vpop.permute.xlu1 %781 }
 0x7dd   :  { %v2985_v50 = vadd.f32 %v782_v30, %v774_v49  ;;  %v253_v30 = vadd.f32 %v2814_v29, %v2929_v36 }
 0x7de   :  { %v685_v52 = vpop.permute.xlu0 %684 }
 0x7df   :  { %2591 = vtanh.f32 %v2985_v50  ;;  %v2989_v53 = vadd.f32 %v685_v52, %v677_v51 }
 0x7e1   :  { %2593 = vtanh.f32 %v2989_v53 }
 0x7e9   :  { %v2592_v54 = vpop.eup %2591 }
 0x7ea   :  { %787 = vrot.lane.b32.xlu1 %v2592_v54, %s2688_s15 }
 0x7eb   :  { %v2594_v55 = vpop.eup %2593 }
 0x7ec   :  { %690 = vrot.lane.b32.xlu0 %v2594_v55, %s2688_s15 }
 0x85c   :  { %v788_v56 = vpop.permute.xlu1 %787 }
 0x85d   :  { %v790_v57 = vmul.f32 %v2588_v42, %v788_v56 }
 0x85e   :  { %v691_v59 = vpop.permute.xlu0 %690 }
 0x85f   :  { %792 = vrot.lane.b32.xlu0 %v790_v57, %s2689_s20  ;;  %v693_v61 = vmul.f32 %v2590_v45, %v691_v59 }
 0x861   :  { %796 = vrot.lane.b32.xlu1 %v693_v61, %s2690_s7 }
 0x8d1   :  { %v793_v62 = vpop.permute.xlu0 %792 }
 0x8d2   :  { %2237 = vmatmul.mubr.msk.f32.vlgmr.msra.gmra.mrb[6].mxu1 %vm141_vm1, %v793_v62 }
 0x8d3   :  { %2448 = vmatpush3.bf16.msra.mxu1 %v2855_v58  ;;  %2255 = vmatprep.mubr.msk.f32.mxu1 %vm2686_vm0, %v2687_v16  ;;  %v797_v0 = vpop.permute.xlu1 %796 }
 0x8d4   :  { %2449 = vmatprep.subr.bf16.mxu1 %v2685_v7  ;;  %v799_v1 = vsel %vm141_vm1, %v793_v62, %v797_v0 }
 0x8d5   :  { %2226 = vmatmul.mubr.msk.f32.vlgmr.msra.gmra.mrb[12].mxu0 %vm393_vm2, %v799_v1 }
 0x8d6   :  { %2460 = vmatpush3.bf16.msra.mxu0 %v2771_v11  ;;  %2266 = vmatprep.mubr.msk.f32.mxu0 %vm2686_vm0, %v2687_v16 }
 0x8d7   :  { %2451 = vmatpush3.bf16.msra.mxu1 %v2861_v60  ;;  %2461 = vmatprep.subr.bf16.mxu0 %v2685_v7 }
 0x8d8   :  { %2452 = vmatprep.subr.bf16.mxu1 %v2685_v7 }
 0x8da   :  { %2463 = vmatpush3.bf16.msra.mxu0 %v2781_v15 }
 0x8db   :  { %2454 = vmatpush3.bf16.msra.mxu1 %v2871_v63  ;;  %2464 = vmatprep.subr.bf16.mxu0 %v2685_v7 }
 0x8dc   :  { %2455 = vmatprep.subr.bf16.mxu1 %v2685_v7 }
 0x8df   :  { %2457 = vmatpush3.bf16.msra.mxu1 %v2881_v2 }
 0x8e0   :  { %2476 = vmatprep.subr.bf16.mxu1 %v2685_v7 }
 0x9a5   :  { %v965_v4 = vpop.f32.mrb[6].mxu1 }
 0x9a6   :  { %v969_v5 = vadd.f32 %v965_v4, %v248_v3  ;;  %v2238_v6 = vpop.f32.mrb[7].mxu1 }
 0x9a8   :  { %2595 = vtanh.f32 %v969_v5  ;;  %v869_v8 = vpop.f32.mrb[12].mxu0  ;;  %v1973_v13 = vmul.f32 -1.442695, %v969_v5 }
 0x9a9   :  { %v870_v9 = vadd.f32 %v2940_v40, %v869_v8  ;;  %v2227_v10 = vpop.f32.mrb[13].mxu0 }
 0x9ab   :  { %2597 = vtanh.f32 %v870_v9  ;;  %v1971_v14 = vmul.f32 -1.442695, %v870_v9 }
 0x9ac   :  { %2599 = vpow2.f32 %v1973_v13 }
 0x9ad   :  { %2601 = vpow2.f32 %v1971_v14 }
 0x9b2   :  { %v2596_v12 = vpop.eup %2595 }
 0x9b3   :  { %979 = vrot.lane.b32.xlu1 %v2596_v12, %s2688_s15 }
 0x9b5   :  { %v2598_v46 = vpop.eup %2597 }
 0x9b6   :  { %882 = vrot.lane.b32.xlu0 %v2598_v46, %s2688_s15  ;;  %v2600_v33 = vpop.eup %2599 }
 0x9b7   :  { %v973_v19 = vadd.f32 1.0, %v2600_v33  ;;  %v2602_v20 = vpop.eup %2601 }
 0x9b8   :  { %v876_v21 = vadd.f32 1.0, %v2602_v20 }
 0x9b9   :  { %2603 = vrcp.f32 %v973_v19 }
 0x9ba   :  { %2605 = vrcp.f32 %v876_v21 }
 0x9c3   :  { %v2604_v22 = vpop.eup %2603 }
 0x9c4   :  { %v2606_v25 = vpop.eup %2605  ;;  %v977_v28 = vmul.f32 %v2604_v22, %v2985_v50 }
 0x9c5   :  { %v880_v17 = vmul.f32 %v2606_v25, %v2989_v53 }
 0xa25   :  { %v980_v23 = vpop.permute.xlu1 %979 }
 0xa26   :  { %v982_v24 = vmul.f32 %v2604_v22, %v980_v23 }
 0xa28   :  { %984 = vrot.lane.b32.xlu1 %v982_v24, %s2688_s15  ;;  %v883_v26 = vpop.permute.xlu0 %882 }
 0xa29   :  { %v885_v27 = vmul.f32 %v2606_v25, %v883_v26 }
 0xa2b   :  { %887 = vrot.lane.b32.xlu0 %v885_v27, %s2688_s15 }
 0xa9a   :  { %v985_v31 = vpop.permute.xlu1 %984 }
 0xa9b   :  { %v3023_v32 = vadd.f32 %v985_v31, %v977_v28  ;;  %v258_v28 = vadd.f32 %v2927_v35, %v2814_v29 }
 0xa9d   :  { %2607 = vtanh.f32 %v3023_v32  ;;  %v888_v18 = vpop.permute.xlu0 %887 }
 0xa9e   :  { %v3027_v34 = vadd.f32 %v888_v18, %v880_v17 }
 0xaa0   :  { %2609 = vtanh.f32 %v3027_v34 }
 0xaa7   :  { %v2608_v39 = vpop.eup %2607 }
 0xaa8   :  { %990 = vrot.lane.b32.xlu1 %v2608_v39, %s2688_s15 }
 0xaaa   :  { %v2610_v41 = vpop.eup %2609 }
 0xaab   :  { %893 = vrot.lane.b32.xlu0 %v2610_v41, %s2688_s15 }
 0xb1a   :  { %v991_v42 = vpop.permute.xlu1 %990 }
 0xb1b   :  { %v993_v43 = vmul.f32 %v2604_v22, %v991_v42 }
 0xb1d   :  { %995 = vrot.lane.b32.xlu0 %v993_v43, %s2689_s20  ;;  %v894_v44 = vpop.permute.xlu0 %893 }
 0xb1e   :  { %v896_v45 = vmul.f32 %v2606_v25, %v894_v44 }
 0xb20   :  { %999 = vrot.lane.b32.xlu1 %v896_v45, %s2690_s7 }
 0xb8f   :  { %v996_v47 = vpop.permute.xlu0 %995 }
 0xb90   :  { %2267 = vmatmul.mubr.msk.f32.vlgmr.msra.gmra.mrb[14].mxu0 %vm141_vm1, %v996_v47 }
 0xb91   :  { %2466 = vmatpush3.bf16.msra.mxu0 %v2855_v58  ;;  %2285 = vmatprep.mubr.msk.f32.mxu0 %vm2686_vm0, %v2687_v16 }
 0xb92   :  { %2467 = vmatprep.subr.bf16.mxu0 %v2685_v7  ;;  %v1000_v48 = vpop.permute.xlu1 %999 }
 0xb93   :  { %v1002_v49 = vsel %vm141_vm1, %v996_v47, %v1000_v48 }
 0xb94   :  { %2256 = vmatmul.mubr.msk.f32.vlgmr.msra.gmra.mrb[8].mxu1 %vm393_vm2, %v1002_v49 }
 0xb95   :  { %2469 = vmatpush3.bf16.msra.mxu0 %v2861_v60  ;;  %2478 = vmatpush3.bf16.msra.mxu1 %v2771_v11 }
 0xb96   :  { %2470 = vmatprep.subr.bf16.mxu0 %v2685_v7  ;;  %2479 = vmatprep.subr.bf16.mxu1 %v2685_v7 }
 0xb97   :  { %2296 = vmatprep.mubr.msk.f32.mxu1 %vm2686_vm0, %v2687_v16 }
 0xb99   :  { %2472 = vmatpush3.bf16.msra.mxu0 %v2871_v63  ;;  %2481 = vmatpush3.bf16.msra.mxu1 %v2781_v15 }
 0xb9a   :  { %2473 = vmatprep.subr.bf16.mxu0 %v2685_v7  ;;  %2482 = vmatprep.subr.bf16.mxu1 %v2685_v7 }
 0xb9d   :  { %2475 = vmatpush3.bf16.msra.mxu0 %v2881_v2 }
 0xb9e   :  { %2494 = vmatprep.subr.bf16.mxu0 %v2685_v7 }
 0xc63   :  { %v1168_v50 = vpop.f32.mrb[14].mxu0 }
 0xc64   :  { %v1172_v51 = vadd.f32 %v1168_v50, %v253_v30  ;;  %v2268_v52 = vpop.f32.mrb[15].mxu0 }
 0xc66   :  { %2611 = vtanh.f32 %v1172_v51  ;;  %v1977_v59 = vmul.f32 -1.442695, %v1172_v51 }
 0xc67   :  { %v1072_v53 = vpop.f32.mrb[8].mxu1 }
 0xc68   :  { %v1073_v54 = vadd.f32 %v2940_v40, %v1072_v53  ;;  %v2257_v55 = vpop.f32.mrb[9].mxu1 }
 0xc6a   :  { %2613 = vtanh.f32 %v1073_v54  ;;  %v1975_v61 = vmul.f32 -1.442695, %v1073_v54 }
 0xc6b   :  { %2615 = vpow2.f32 %v1977_v59 }
 0xc6c   :  { %2617 = vpow2.f32 %v1975_v61 }
 0xc70   :  { %v2612_v56 = vpop.eup %2611 }
 0xc71   :  { %1182 = vrot.lane.b32.xlu1 %v2612_v56, %s2688_s15 }
 0xc74   :  { %v2614_v57 = vpop.eup %2613 }
 0xc75   :  { %1085 = vrot.lane.b32.xlu0 %v2614_v57, %s2688_s15  ;;  %v2616_v36 = vpop.eup %2615 }
 0xc76   :  { %v1176_v62 = vadd.f32 1.0, %v2616_v36  ;;  %v2618_v0 = vpop.eup %2617 }
 0xc77   :  { %v1079_v1 = vadd.f32 1.0, %v2618_v0 }
 0xc78   :  { %2619 = vrcp.f32 %v1176_v62 }
 0xc79   :  { %2621 = vrcp.f32 %v1079_v1 }
 0xc82   :  { %v2620_v3 = vpop.eup %2619 }
 0xc83   :  { %v2622_v6 = vpop.eup %2621  ;;  %v1180_v10 = vmul.f32 %v2620_v3, %v3023_v32 }
 0xc84   :  { %v1083_v13 = vmul.f32 %v2622_v6, %v3027_v34 }
 0xce3   :  { %v1183_v4 = vpop.permute.xlu1 %1182 }
 0xce4   :  { %v1185_v5 = vmul.f32 %v2620_v3, %v1183_v4 }
 0xce6   :  { %1187 = vrot.lane.b32.xlu1 %v1185_v5, %s2688_s15 }
 0xce7   :  { %v1086_v8 = vpop.permute.xlu0 %1085 }
 0xce8   :  { %v1088_v9 = vmul.f32 %v2622_v6, %v1086_v8 }
 0xcea   :  { %1090 = vrot.lane.b32.xlu0 %v1088_v9, %s2688_s15  ;;  %v263_v9 = vadd.f32 %v2814_v29, %v2933_v38 }
 0xd58   :  { %v1188_v12 = vpop.permute.xlu1 %1187 }
 0xd59   :  { %v3061_v46 = vadd.f32 %v1188_v12, %v1180_v10 }
 0xd5b   :  { %2623 = vtanh.f32 %v3061_v46 }
 0xd5c   :  { %v1091_v14 = vpop.permute.xlu0 %1090 }
 0xd5d   :  { %v3065_v33 = vadd.f32 %v1091_v14, %v1083_v13 }
 0xd5f   :  { %2625 = vtanh.f32 %v3065_v33 }
 0xd65   :  { %v2624_v19 = vpop.eup %2623 }
 0xd66   :  { %1193 = vrot.lane.b32.xlu1 %v2624_v19, %s2688_s15 }
 0xd69   :  { %v2626_v20 = vpop.eup %2625 }
 0xd6a   :  { %1096 = vrot.lane.b32.xlu0 %v2626_v20, %s2688_s15 }
 0xdd8   :  { %v1194_v21 = vpop.permute.xlu1 %1193 }
 0xdd9   :  { %v1196_v22 = vmul.f32 %v2620_v3, %v1194_v21 }
 0xddb   :  { %1198 = vrot.lane.b32.xlu0 %v1196_v22, %s2689_s20 }
 0xddc   :  { %v1097_v23 = vpop.permute.xlu0 %1096 }
 0xddd   :  { %v1099_v24 = vmul.f32 %v2622_v6, %v1097_v23 }
 0xddf   :  { %1202 = vrot.lane.b32.xlu1 %v1099_v24, %s2690_s7 }
 0xe4d   :  { %v1199_v25 = vpop.permute.xlu0 %1198 }
 0xe4e   :  { %2297 = vmatmul.mubr.msk.f32.vlgmr.msra.gmra.mrb[10].mxu1 %vm141_vm1, %v1199_v25 }
 0xe4f   :  { %2484 = vmatpush3.bf16.msra.mxu1 %v2855_v58  ;;  %2315 = vmatprep.mubr.msk.f32.mxu1 %vm2686_vm0, %v2687_v16 }
 0xe50   :  { %2485 = vmatprep.subr.bf16.mxu1 %v2685_v7 }
 0xe51   :  { %v1203_v26 = vpop.permute.xlu1 %1202 }
 0xe52   :  { %v1205_v27 = vsel %vm141_vm1, %v1199_v25, %v1203_v26 }
 0xe53   :  { %2487 = vmatpush3.bf16.msra.mxu1 %v2861_v60  ;;  %2286 = vmatmul.mubr.msk.f32.vlgmr.msra.gmra.mrb[16].mxu0 %vm393_vm2, %v1205_v27 }
 0xe54   :  { %2488 = vmatprep.subr.bf16.mxu1 %v2685_v7  ;;  %2496 = vmatpush3.bf16.msra.mxu0 %v2771_v11 }
 0xe55   :  { %2326 = vmatprep.mubr.msk.f32.mxu0 %vm2686_vm0, %v2687_v16  ;;  %2497 = vmatprep.subr.bf16.mxu0 %v2685_v7 }
 0xe57   :  { %2490 = vmatpush3.bf16.msra.mxu1 %v2871_v63 }
 0xe58   :  { %2491 = vmatprep.subr.bf16.mxu1 %v2685_v7  ;;  %2499 = vmatpush3.bf16.msra.mxu0 %v2781_v15 }
 0xe59   :  { %2500 = vmatprep.subr.bf16.mxu0 %v2685_v7 }
 0xe5b   :  { %2493 = vmatpush3.bf16.msra.mxu1 %v2881_v2 }
 0xe5c   :  { %2512 = vmatprep.subr.bf16.mxu1 %v2685_v7 }
 0xf21   :  { %v1371_v31 = vpop.f32.mrb[10].mxu1 }
 0xf22   :  { %v1375_v32 = vadd.f32 %v1371_v31, %v258_v28  ;;  %v2298_v17 = vpop.f32.mrb[11].mxu1 }
 0xf24   :  { %2627 = vtanh.f32 %v1375_v32  ;;  %v1981_v43 = vmul.f32 -1.442695, %v1375_v32 }
 0xf26   :  { %v1275_v18 = vpop.f32.mrb[16].mxu0 }
 0xf27   :  { %v1276_v34 = vadd.f32 %v2940_v40, %v1275_v18  ;;  %v2287_v39 = vpop.f32.mrb[17].mxu0 }
 0xf29   :  { %2629 = vtanh.f32 %v1276_v34  ;;  %v1979_v44 = vmul.f32 -1.442695, %v1276_v34 }
 0xf2a   :  { %2631 = vpow2.f32 %v1981_v43 }
 0xf2b   :  { %2633 = vpow2.f32 %v1979_v44 }
 0xf2e   :  { %v2628_v41 = vpop.eup %2627 }
 0xf2f   :  { %1385 = vrot.lane.b32.xlu1 %v2628_v41, %s2688_s15 }
 0xf33   :  { %v2630_v42 = vpop.eup %2629 }
 0xf34   :  { %1288 = vrot.lane.b32.xlu0 %v2630_v42, %s2688_s15  ;;  %v2632_v35 = vpop.eup %2631 }
 0xf35   :  { %v1379_v45 = vadd.f32 1.0, %v2632_v35  ;;  %v2634_v47 = vpop.eup %2633 }
 0xf36   :  { %v1282_v48 = vadd.f32 1.0, %v2634_v47 }
 0xf37   :  { %2635 = vrcp.f32 %v1379_v45 }
 0xf38   :  { %2637 = vrcp.f32 %v1282_v48 }
 0xf41   :  { %v2636_v49 = vpop.eup %2635 }
 0xf42   :  { %v2638_v51 = vpop.eup %2637  ;;  %v1383_v54 = vmul.f32 %v2636_v49, %v3061_v46 }
 0xf43   :  { %v1286_v57 = vmul.f32 %v2638_v51, %v3065_v33 }
 0xfa1   :  { %v1386_v30 = vpop.permute.xlu1 %1385 }
 0xfa2   :  { %v1388_v50 = vmul.f32 %v2636_v49, %v1386_v30 }
 0xfa4   :  { %1390 = vrot.lane.b32.xlu1 %v1388_v50, %s2688_s15 }
 0xfa6   :  { %v1289_v52 = vpop.permute.xlu0 %1288 }
 0xfa7   :  { %v1291_v53 = vmul.f32 %v2638_v51, %v1289_v52 }
 0xfa9   :  { %1293 = vrot.lane.b32.xlu0 %v1291_v53, %s2688_s15 }
0x1016   :  { %v1391_v55 = vpop.permute.xlu1 %1390 }
0x1017   :  { %v3099_v56 = vadd.f32 %v1391_v55, %v1383_v54 }
0x1019   :  { %2639 = vtanh.f32 %v3099_v56 }
0x101b   :  { %v1294_v59 = vpop.permute.xlu0 %1293 }
0x101c   :  { %v3103_v61 = vadd.f32 %v1294_v59, %v1286_v57 }
0x101e   :  { %2641 = vtanh.f32 %v3103_v61 }
0x1023   :  { %v2640_v36 = vpop.eup %2639 }
0x1024   :  { %1396 = vrot.lane.b32.xlu1 %v2640_v36, %s2688_s15 }
0x1028   :  { %v2642_v62 = vpop.eup %2641 }
0x1029   :  { %1299 = vrot.lane.b32.xlu0 %v2642_v62, %s2688_s15 }
0x1096   :  { %v1397_v0 = vpop.permute.xlu1 %1396 }
0x1097   :  { %v1399_v1 = vmul.f32 %v2636_v49, %v1397_v0 }
0x1099   :  { %1401 = vrot.lane.b32.xlu0 %v1399_v1, %s2689_s20 }
0x109b   :  { %v1300_v3 = vpop.permute.xlu0 %1299 }
0x109c   :  { %v1302_v4 = vmul.f32 %v2638_v51, %v1300_v3 }
0x109e   :  { %1405 = vrot.lane.b32.xlu1 %v1302_v4, %s2690_s7 }
0x110b   :  { %v1402_v5 = vpop.permute.xlu0 %1401 }
0x110c   :  { %2327 = vmatmul.mubr.msk.f32.vlgmr.msra.gmra.mrb[18].mxu0 %vm141_vm1, %v1402_v5 }
0x110d   :  { %2502 = vmatpush3.bf16.msra.mxu0 %v2855_v58  ;;  %2345 = vmatprep.mubr.msk.f32.mxu0 %vm2686_vm0, %v2687_v16 }
0x110e   :  { %2503 = vmatprep.subr.bf16.mxu0 %v2685_v7 }
0x1110   :  { %v1406_v6 = vpop.permute.xlu1 %1405 }
0x1111   :  { %2505 = vmatpush3.bf16.msra.mxu0 %v2861_v60  ;;  %v1408_v8 = vsel %vm141_vm1, %v1402_v5, %v1406_v6 }
0x1112   :  { %2506 = vmatprep.subr.bf16.mxu0 %v2685_v7  ;;  %2316 = vmatmul.mubr.msk.f32.vlgmr.msra.gmra.mrb[12].mxu1 %vm393_vm2, %v1408_v8 }
0x1113   :  { %2514 = vmatpush3.bf16.msra.mxu1 %v2771_v11  ;;  %2356 = vmatprep.mubr.msk.f32.mxu1 %vm2686_vm0, %v2687_v16 }
0x1114   :  { %2515 = vmatprep.subr.bf16.mxu1 %v2685_v7 }
0x1115   :  { %2508 = vmatpush3.bf16.msra.mxu0 %v2871_v63 }
0x1116   :  { %2509 = vmatprep.subr.bf16.mxu0 %v2685_v7 }
0x1117   :  { %2517 = vmatpush3.bf16.msra.mxu1 %v2781_v15 }
0x1118   :  { %2518 = vmatprep.subr.bf16.mxu1 %v2685_v7 }
0x1119   :  { %2511 = vmatpush3.bf16.msra.mxu0 %v2881_v2 }
0x11df   :  { %v1574_v10 = vpop.f32.mrb[18].mxu0 }
0x11e0   :  { %v1578_v11 = vadd.f32 %v1574_v10, %v263_v9  ;;  %v2328_v12 = vpop.f32.mrb[19].mxu0 }
0x11e2   :  { %2643 = vtanh.f32 %v1578_v11  ;;  %v1985_v19 = vmul.f32 -1.442695, %v1578_v11 }
0x11e5   :  { %v1478_v46 = vpop.f32.mrb[12].mxu1 }
0x11e6   :  { %v1479_v13 = vadd.f32 %v2940_v40, %v1478_v46  ;;  %v2317_v14 = vpop.f32.mrb[13].mxu1 }
0x11e8   :  { %2645 = vtanh.f32 %v1479_v13  ;;  %v1983_v20 = vmul.f32 -1.442695, %v1479_v13 }
0x11e9   :  { %2647 = vpow2.f32 %v1985_v19 }
0x11ea   :  { %2649 = vpow2.f32 %v1983_v20 }
0x11ec   :  { %v2644_v33 = vpop.eup %2643 }
0x11ed   :  { %1588 = vrot.lane.b32.xlu1 %v2644_v33, %s2688_s15 }
0x11f2   :  { %v2646_v15 = vpop.eup %2645 }
0x11f3   :  { %1491 = vrot.lane.b32.xlu0 %v2646_v15, %s2688_s15  ;;  %v2648_v29 = vpop.eup %2647 }
0x11f4   :  { %v1582_v38 = vadd.f32 1.0, %v2648_v29  ;;  %v2650_v21 = vpop.eup %2649 }
0x11f5   :  { %v1485_v22 = vadd.f32 1.0, %v2650_v21 }
0x11f6   :  { %2651 = vrcp.f32 %v1582_v38 }
0x11f7   :  { %2653 = vrcp.f32 %v1485_v22 }
0x1200   :  { %v2652_v23 = vpop.eup %2651 }
0x1201   :  { %v2654_v26 = vpop.eup %2653  ;;  %v1586_v31 = vmul.f32 %v2652_v23, %v3099_v56 }
0x1202   :  { %v1489_v18 = vmul.f32 %v2654_v26, %v3103_v61 }
0x125f   :  { %v1589_v24 = vpop.permute.xlu1 %1588 }
0x1260   :  { %v1591_v25 = vmul.f32 %v2652_v23, %v1589_v24 }
0x1262   :  { %1593 = vrot.lane.b32.xlu1 %v1591_v25, %s2688_s15 }
0x1265   :  { %v1492_v27 = vpop.permute.xlu0 %1491 }
0x1266   :  { %v1494_v28 = vmul.f32 %v2654_v26, %v1492_v27 }
0x1268   :  { %1496 = vrot.lane.b32.xlu0 %v1494_v28, %s2688_s15 }
0x12d4   :  { %v1594_v32 = vpop.permute.xlu1 %1593 }
0x12d5   :  { %v1596_v17 = vadd.f32 %v1594_v32, %v1586_v31 }
0x12d7   :  { %2655 = vtanh.f32 %v1596_v17 }
0x12da   :  { %v1497_v34 = vpop.permute.xlu0 %1496 }
0x12db   :  { %v1499_v39 = vadd.f32 %v1497_v34, %v1489_v18 }
0x12dd   :  { %2657 = vtanh.f32 %v1499_v39 }
0x12e1   :  { %v2656_v41 = vpop.eup %2655 }
0x12e2   :  { %1599 = vrot.lane.b32.xlu1 %v2656_v41, %s2688_s15 }
0x12e7   :  { %v2658_v42 = vpop.eup %2657 }
0x12e8   :  { %1502 = vrot.lane.b32.xlu0 %v2658_v42, %s2688_s15 }
0x1354   :  { %v1600_v43 = vpop.permute.xlu1 %1599 }
0x1355   :  { %v1602_v44 = vmul.f32 %v2652_v23, %v1600_v43 }
0x1357   :  { %1604 = vrot.lane.b32.xlu0 %v1602_v44, %s2689_s20 }
0x135a   :  { %v1503_v35 = vpop.permute.xlu0 %1502 }
0x135b   :  { %v1505_v45 = vmul.f32 %v2654_v26, %v1503_v35 }
0x135d   :  { %1608 = vrot.lane.b32.xlu1 %v1505_v45, %s2690_s7 }
0x13c9   :  { %v1605_v47 = vpop.permute.xlu0 %1604 }
0x13ca   :  { %2357 = vmatmul.mubr.msk.f32.vlgmr.msra.gmra.mrb[14].mxu1 %vm141_vm1, %v1605_v47 }
0x13cb   :  { %2520 = vmatpush3.bf16.msra.mxu1 %v2855_v58  ;;  %2375 = vmatprep.mubr.msk.f32.mxu1 %vm2686_vm0, %v2687_v16  ;;  %v2683_v16 = vld [vmem:[%s3189_s5] ss:$0 sm:$0xff] }
0x13cc   :  { %2521 = vmatprep.subr.bf16.mxu1 %v2685_v7  ;;  %v268_v58 = vadd.f32 %v2683_v16, %v2931_v37 }
0x13cf   :  { %2523 = vmatpush3.bf16.msra.mxu1 %v2861_v60  ;;  %v1609_v48 = vpop.permute.xlu1 %1608 }
0x13d0   :  { %2524 = vmatprep.subr.bf16.mxu1 %v2685_v7  ;;  %v1611_v49 = vsel %vm141_vm1, %v1605_v47, %v1609_v48 }
0x13d1   :  { %2346 = vmatmul.mubr.msk.f32.vlgmr.msra.gmra.mrb[20].mxu0 %vm393_vm2, %v1611_v49 }
0x13d3   :  { %2526 = vmatpush3.bf16.msra.mxu1 %v2871_v63 }
0x13d4   :  { %2527 = vmatprep.subr.bf16.mxu1 %v2685_v7 }
0x13d7   :  { %2529 = vmatpush3.bf16.msra.mxu1 %v2881_v2 }
0x149d   :  { %v1777_v60 = vpop.f32.mrb[14].mxu1 }
0x149e   :  { %v1781_v30 = vadd.f32 %v1777_v60, %v268_v58  ;;  %v2358_v50 = vpop.f32.mrb[15].mxu1 }
0x14a0   :  { %2659 = vtanh.f32 %v1781_v30  ;;  %v1989_v2 = vmul.f32 -1.442695, %v1781_v30 }
0x14a4   :  { %v1681_v51 = vpop.f32.mrb[20].mxu0 }
0x14a5   :  { %v1682_v52 = vadd.f32 %v2940_v40, %v1681_v51  ;;  %v2347_v53 = vpop.f32.mrb[21].mxu0 }
0x14a7   :  { %2661 = vtanh.f32 %v1682_v52  ;;  %v1987_v54 = vmul.f32 -1.442695, %v1682_v52 }
0x14a8   :  { %2663 = vpow2.f32 %v1989_v2 }
0x14a9   :  { %2665 = vpow2.f32 %v1987_v54 }
0x14aa   :  { %v2660_v63 = vpop.eup %2659 }
0x14ab   :  { %1791 = vrot.lane.b32.xlu1 %v2660_v63, %s2688_s15 }
0x14b1   :  { %v2662_v7 = vpop.eup %2661 }
0x14b2   :  { %1694 = vrot.lane.b32.xlu0 %v2662_v7, %s2688_s15  ;;  %v2664_v37 = vpop.eup %2663 }
0x14b3   :  { %v1785_v55 = vadd.f32 1.0, %v2664_v37  ;;  %v2666_v56 = vpop.eup %2665 }
0x14b4   :  { %v1688_v57 = vadd.f32 1.0, %v2666_v56 }
0x14b5   :  { %2667 = vrcp.f32 %v1785_v55 }
0x14b6   :  { %2669 = vrcp.f32 %v1688_v57 }
0x14bf   :  { %v2668_v59 = vpop.eup %2667 }
0x14c0   :  { %v2670_v62 = vpop.eup %2669  ;;  %v1789_v3 = vmul.f32 %v2668_v59, %v1596_v17  ;;  %v15_v17 = vstv %s3192_s9 }
0x14c1   :  { %v1692_v6 = vmul.f32 %v2670_v62, %v1499_v39  ;;  %16 = vst [vmem:[#allocation2] sm:$0x1] %v15_v17  ;;  %v1992_v39 = vld [vmem:[%s3193_s8] ss:$0 sm:$0xff] }
0x14c8   :  { %v1993_v35 = vld [vmem:[#allocation2] ss:$0 sm:$0xff] }
0x151d   :  { %v1792_v61 = vpop.permute.xlu1 %1791 }
0x151e   :  { %v1794_v36 = vmul.f32 %v2668_v59, %v1792_v61 }
0x1520   :  { %1796 = vrot.lane.b32.xlu1 %v1794_v36, %s2688_s15 }
0x1524   :  { %v1695_v0 = vpop.permute.xlu0 %1694 }
0x1525   :  { %v1697_v1 = vmul.f32 %v2670_v62, %v1695_v0 }
0x1527   :  { %1699 = vrot.lane.b32.xlu0 %v1697_v1, %s2688_s15 }
0x1592   :  { %v1797_v4 = vpop.permute.xlu1 %1796 }
0x1593   :  { %v1799_v5 = vadd.f32 %v1797_v4, %v1789_v3 }
0x1595   :  { %2671 = vtanh.f32 %v1799_v5 }
0x1599   :  { %v1700_v8 = vpop.permute.xlu0 %1699 }
0x159a   :  { %v1702_v9 = vadd.f32 %v1700_v8, %v1692_v6 }
0x159c   :  { %2673 = vtanh.f32 %v1702_v9 }
0x159f   :  { %v2672_v10 = vpop.eup %2671 }
0x15a0   :  { %1802 = vrot.lane.b32.xlu1 %v2672_v10, %s2688_s15 }
0x15a6   :  { %v2674_v11 = vpop.eup %2673 }
0x15a7   :  { %1705 = vrot.lane.b32.xlu0 %v2674_v11, %s2688_s15 }
0x1612   :  { %v1803_v12 = vpop.permute.xlu1 %1802 }
0x1613   :  { %v1805_v46 = vmul.f32 %v2668_v59, %v1803_v12 }
0x1615   :  { %1807 = vrot.lane.b32.xlu0 %v1805_v46, %s2689_s20 }
0x1619   :  { %v1706_v13 = vpop.permute.xlu0 %1705 }
0x161a   :  { %v1708_v14 = vmul.f32 %v2670_v62, %v1706_v13 }
0x161c   :  { %1811 = vrot.lane.b32.xlu1 %v1708_v14, %s2690_s7 }
0x1687   :  { %v1808_v33 = vpop.permute.xlu0 %1807 }
0x168e   :  { %v1812_v15 = vpop.permute.xlu1 %1811 }
0x168f   :  { %v1814_v19 = vsel %vm141_vm1, %v1808_v33, %v1812_v15 }
0x1690   :  { %2376 = vmatmul.mubr.msk.f32.vlgmr.msra.gmra.mrb[16].mxu1 %vm393_vm2, %v1814_v19 }
0x1763   :  { %v1884_v20 = vpop.f32.mrb[16].mxu1 }
0x1764   :  { %v1885_v29 = vadd.f32 %v2940_v40, %v1884_v20  ;;  %v2377_v38 = vpop.f32.mrb[17].mxu1 }
0x1766   :  { %2675 = vtanh.f32 %v1885_v29  ;;  %v1991_v22 = vmul.f32 -1.442695, %v1885_v29 }
0x1768   :  { %2677 = vpow2.f32 %v1991_v22 }
0x1770   :  { %v2676_v21 = vpop.eup %2675 }
0x1771   :  { %1897 = vrot.lane.b32.xlu0 %v2676_v21, %s2688_s15 }
0x1772   :  { %v2678_v23 = vpop.eup %2677 }
0x1773   :  { %v1891_v24 = vadd.f32 1.0, %v2678_v23 }
0x1775   :  { %2679 = vrcp.f32 %v1891_v24 }
0x177f   :  { %v2680_v25 = vpop.eup %2679 }
0x1780   :  { %v1895_v28 = vmul.f32 %v2680_v25, %v1702_v9 }
0x17e3   :  { %v1898_v26 = vpop.permute.xlu0 %1897 }
0x17e4   :  { %v1900_v27 = vmul.f32 %v2680_v25, %v1898_v26 }
0x17e6   :  { %1902 = vrot.lane.b32.xlu1 %v1900_v27, %s2688_s15 }
0x1858   :  { %v1903_v31 = vpop.permute.xlu1 %1902 }
0x1859   :  { %v1905_v32 = vadd.f32 %v1903_v31, %v1895_v28 }
0x185b   :  { %2681 = vtanh.f32 %v1905_v32 }
0x1865   :  { %v2682_v40 = vpop.eup %2681 }
0x1866   :  { %1908 = vrot.lane.b32.xlu0 %v2682_v40, %s2688_s15 }
0x18d8   :  { %v1909_v18 = vpop.permute.xlu0 %1908 }
0x18d9   :  { %v1911_v34 = vmul.f32 %v2680_v25, %v1909_v18 }
0x18db   :  { %1913 = vrot.lane.b32.xlu1 %v1911_v34, %s2690_s7 }
0x194d   :  { %v1914_v41 = vpop.permute.xlu1 %1913 }
0x194e   :  { %v1916_v42 = vsel %vm141_vm1, %v1808_v33, %v1914_v41 }
0x194f   :  { %v1924_v43 = vmul.f32 %v1992_v39, %v1916_v42 }
0x1951   :  { %v1925_v44 = vsel %vm393_vm2, %v1924_v43, 0.0 }
0x1952   :  { %1926 = vadd.xlane.f32.xlu0 %v1925_v44 }
0x19df   :  { %v1927_v45 = vpop.xlane.xlu0 %1926 }
0x19e0   :  { %v1935_v47 = vadd.f32 %v1993_v35, %v1927_v45 }
0x19e2   :  { %1937 = vst.msk [vmem:[%s3194_s10] sm:$0xff] %vm1936_vm3, %v1935_v47 }

</bundles_post_ra>
